<compile_context>
chip_gen: v7x
topology: tpu7x:2x2x1
jax: 0.10.0
libtpu: 0.0.40
codegen_flags: <defaults>
</compile_context>

<pallas_src>
import functools

import jax
import jax.numpy as jnp
from jax.experimental import pallas as pl
from jax.experimental.pallas import tpu as pltpu


def _round_up(x, m):
    return (x + m - 1) // m * m


def _vmem_capacity_bytes():
    try:
        return int(pltpu.get_tpu_info().vmem_capacity_bytes)
    except Exception:
        return 64 * 2**20  # conservative default (v7x per-core VMEM)


# ----------------------------- Pallas kernel --------------------------------


def _tcn_block_kernel(*refs, k, dil, pad, tile_l, has_skip_in, emit_skip_out):
    """One (batch, time-tile) step of the TemporalSkipBlock forward.

    Refs (in order):
      x_ref     : (1, T, Cin_p)      current time tile of x (channel-last, compute dtype)
      w1_ref    : (k*Cin_p, Cout_p)  conv1 taps flattened for one deep MXU contraction
      b1_ref    : (1, Cout_p)  f32
      w2_ref    : (k*Cout_p, Cout_p) conv2 taps flattened
      b2_ref    : (1, Cout_p)  f32
      wd_ref    : (Cin_p, Cout_p)    1x1 downsample
      bd_ref    : (1, Cout_p)  f32
      [skip_ref]: (1, T, Cout_p)     incoming skip (only if has_skip_in)
      y_ref     : (1, T, Cout_p)     relu(out + res)
      [sko_ref] : (1, T, Cout_p)     res or skip+res (only if emit_skip_out)
      xwin_ref  : (pad+T, Cin_p)  VMEM causal window of x  (halo in rows [0, pad))
      hwin_ref  : (pad+T, Cout_p) VMEM causal window of h1 (halo in rows [0, pad))
    """
    idx = 0
    x_ref = refs[idx]; idx += 1
    w1_ref = refs[idx]; idx += 1
    b1_ref = refs[idx]; idx += 1
    w2_ref = refs[idx]; idx += 1
    b2_ref = refs[idx]; idx += 1
    wd_ref = refs[idx]; idx += 1
    bd_ref = refs[idx]; idx += 1
    skip_ref = None
    if has_skip_in:
        skip_ref = refs[idx]; idx += 1
    y_ref = refs[idx]; idx += 1
    sko_ref = None
    if emit_skip_out:
        sko_ref = refs[idx]; idx += 1
    xwin_ref = refs[idx]; idx += 1
    hwin_ref = refs[idx]; idx += 1

    t_idx = pl.program_id(1)
    T = tile_l

    # Reset the causal halo at the start of every batch element's sequence.
    @pl.when(t_idx == 0)
    def _():
        xwin_ref[0:pad, :] = jnp.zeros((pad,) + tuple(xwin_ref.shape[1:]), xwin_ref.dtype)
        hwin_ref[0:pad, :] = jnp.zeros((pad,) + tuple(hwin_ref.shape[1:]), hwin_ref.dtype)

    x_tile = x_ref[0]                                     # (T, Cin_p), compute dtype
    xwin_ref[pad:pad + T, :] = x_tile                     # fresh tile behind the halo

    # --- conv1 (dilated causal) + relu: one (T, k*Cin) x (k*Cin, Cout) matmul ---
    xw = jnp.concatenate(
        [xwin_ref[i * dil:i * dil + T, :] for i in range(k)], axis=-1)
    acc1 = jnp.dot(xw, w1_ref[...], preferred_element_type=jnp.float32)
    h1 = jnp.maximum(acc1 + b1_ref[...], 0.0)
    # dropout1: identity at inference

    # --- conv2 (dilated causal) + relu ------------------------------------------
    hwin_ref[pad:pad + T, :] = h1.astype(hwin_ref.dtype)
    hw = jnp.concatenate(
        [hwin_ref[i * dil:i * dil + T, :] for i in range(k)], axis=-1)
    acc2 = jnp.dot(hw, w2_ref[...], preferred_element_type=jnp.float32)
    h2 = jnp.maximum(acc2 + b2_ref[...], 0.0)
    # dropout2: identity at inference

    # --- 1x1 downsample residual + final relu -----------------------------------
    res = jnp.dot(x_tile, wd_ref[...],
                  preferred_element_type=jnp.float32) + bd_ref[...]
    y_ref[0] = jnp.maximum(h2 + res, 0.0).astype(y_ref.dtype)

    if emit_skip_out:
        if has_skip_in:
            sko_ref[0] = (skip_ref[0].astype(jnp.float32) + res).astype(sko_ref.dtype)
        else:
            sko_ref[0] = res.astype(sko_ref.dtype)

    # --- roll the halo: last `pad` stream rows become the next tile's prefix ----
    xwin_ref[0:pad, :] = xwin_ref[T:T + pad, :]
    hwin_ref[0:pad, :] = hwin_ref[T:T + pad, :]


# ----------------------------- JAX wrapper -----------------------------------


def temporal_skip_block(x, params, *, kernel_size, dilation, use_skips=False,
                        skip=None, tile_l=None, compute_dtype=None):
    """x: (N, C_in, L) in PyTorch NCL layout. Returns NCL output(s).

    compute_dtype: dtype fed to the MXU (x, weights). Defaults to x.dtype;
    pass jnp.bfloat16 for full MXU rate / half the traffic (f32 accumulation).
    """
    N, c_in, L = x.shape
    pad = (kernel_size - 1) * dilation
    assert pad > 0, "kernel_size>1 (chomp of 0 is undefined in the reference)"
    c_out = params["b1"].shape[-1]
    out_dtype = jnp.dtype(x.dtype)
    cd = jnp.dtype(compute_dtype) if compute_dtype is not None else out_dtype

    cin_p = _round_up(c_in, 128)       # lane-dense channels
    cout_p = _round_up(c_out, 128)

    has_skip_in = bool(use_skips and (skip is not None))
    emit_skip_out = bool(use_skips)
    skip_dtype = jnp.dtype(skip.dtype) if has_skip_in else out_dtype

    # --- VMEM-budgeted time tile + scoped-VMEM limit -----------------------------
    vmem_cap = _vmem_capacity_bytes()
    if tile_l is None:
        w_bytes = (kernel_size * cin_p * cout_p + kernel_size * cout_p * cout_p
                   + cin_p * cout_p) * cd.itemsize + 3 * cout_p * 4
        per_row = 2 * (cin_p * cd.itemsize + cout_p * out_dtype.itemsize)      # x in + y out (2-buf)
        per_row += 2 * cout_p * skip_dtype.itemsize * (int(has_skip_in) + int(emit_skip_out))
        per_row += (1 + kernel_size) * (cin_p + cout_p) * cd.itemsize          # windows + fused operands
        per_row += 3 * cout_p * 4                                              # f32 accumulators
        budget = int(vmem_cap * 0.6) - w_bytes - pad * (cin_p + cout_p) * cd.itemsize - (2 << 20)
        tile_l = max(budget // max(per_row, 1), 8)
        tile_l = min((int(tile_l) // 8) * 8, 2048)
    tile_l = _round_up(max(int(tile_l), 8), 8)
    tile_l = min(tile_l, _round_up(L, 8))
    Lp = _round_up(L, tile_l)
    n_tiles = Lp // tile_l

    # glue: NCL -> NLC, pad time/channels, cast to the MXU compute dtype.
    # TODO(synk): for a stacked TCN keep activations in this padded NLC layout
    # between blocks (and split L across the two v7x TensorCores with a `pad`
    # halo when N == 1); transpose/pad/crop only once at model entry/exit.
    x_nlc = jnp.transpose(x, (0, 2, 1))
    xp = jnp.pad(x_nlc, ((0, 0), (0, Lp - L), (0, cin_p - c_in))).astype(cd)

    # weights: pad to lane-dense shapes, cast, flatten taps for the fused matmul.
    w1 = jnp.pad(params["w1_taps"], ((0, 0), (0, cin_p - c_in), (0, cout_p - c_out)))
    w2 = jnp.pad(params["w2_taps"], ((0, 0), (0, cout_p - c_out), (0, cout_p - c_out)))
    w1 = w1.astype(cd).reshape(kernel_size * cin_p, cout_p)
    w2 = w2.astype(cd).reshape(kernel_size * cout_p, cout_p)
    wd = jnp.pad(params["wd"], ((0, cin_p - c_in), (0, cout_p - c_out))).astype(cd)
    b1 = jnp.pad(params["b1"].astype(jnp.float32), ((0, 0), (0, cout_p - c_out)))
    b2 = jnp.pad(params["b2"].astype(jnp.float32), ((0, 0), (0, cout_p - c_out)))
    bd = jnp.pad(params["bd"].astype(jnp.float32), ((0, 0), (0, cout_p - c_out)))

    inputs = [xp, w1, b1, w2, b2, wd, bd]
    if has_skip_in:
        skip_nlc = jnp.transpose(skip, (0, 2, 1))
        skip_p = jnp.pad(skip_nlc, ((0, 0), (0, Lp - L), (0, cout_p - c_out)))
        inputs.append(skip_p)

    out_shapes = [jax.ShapeDtypeStruct((N, Lp, cout_p), out_dtype)]
    if emit_skip_out:
        out_shapes.append(jax.ShapeDtypeStruct((N, Lp, cout_p), skip_dtype))

    # update the skip accumulator in place (skip input index 7 -> sko output index 1)
    io_aliases = {7: 1} if has_skip_in else {}

    kern = functools.partial(
        _tcn_block_kernel, k=kernel_size, dil=dilation, pad=pad, tile_l=tile_l,
        has_skip_in=has_skip_in, emit_skip_out=emit_skip_out)

    def run(weight_mode):
        wkw = {} if weight_mode is None else {"pipeline_mode": weight_mode}
        in_specs = [
            pl.BlockSpec((1, tile_l, cin_p), lambda b, t: (b, t, 0)),
            pl.BlockSpec((kernel_size * cin_p, cout_p), lambda b, t: (0, 0), **wkw),
            pl.BlockSpec((1, cout_p), lambda b, t: (0, 0), **wkw),
            pl.BlockSpec((kernel_size * cout_p, cout_p), lambda b, t: (0, 0), **wkw),
            pl.BlockSpec((1, cout_p), lambda b, t: (0, 0), **wkw),
            pl.BlockSpec((cin_p, cout_p), lambda b, t: (0, 0), **wkw),
            pl.BlockSpec((1, cout_p), lambda b, t: (0, 0), **wkw),
        ]
        if has_skip_in:
            in_specs.append(pl.BlockSpec((1, tile_l, cout_p), lambda b, t: (b, t, 0)))
        out_specs = [pl.BlockSpec((1, tile_l, cout_p), lambda b, t: (b, t, 0))]
        if emit_skip_out:
            out_specs.append(pl.BlockSpec((1, tile_l, cout_p), lambda b, t: (b, t, 0)))
        return pl.pallas_call(
            kern,
            out_shape=tuple(out_shapes),
            grid_spec=pltpu.PrefetchScalarGridSpec(
                num_scalar_prefetch=0,
                grid=(N, n_tiles),
                in_specs=in_specs,
                out_specs=out_specs,
                scratch_shapes=[
                    pltpu.VMEM((pad + tile_l, cin_p), cd),   # x causal window
                    pltpu.VMEM((pad + tile_l, cout_p), cd),  # conv1-activation window
                ]),
            input_output_aliases=io_aliases,
            compiler_params=pltpu.CompilerParams(
                # time axis must remain the inner, sequential axis (causal carry).
                dimension_semantics=("parallel", "arbitrary"),
                vmem_limit_bytes=min(int(vmem_cap * 0.9), 128 * 2**20)),
        )(*inputs)

    try:
        # constant-index weight/bias blocks: single-buffered (halves weight VMEM).
        outs = run(pl.Buffered(buffer_count=1))
    except Exception:
        # Fallback for Pallas versions without single-buffer pipeline_mode support.
        outs = run(None)

    # glue: crop lane/time padding, NLC -> NCL.
    y = jnp.transpose(outs[0][:, :L, :c_out], (0, 2, 1)).astype(out_dtype)
    if use_skips:
        new_skip = jnp.transpose(outs[1][:, :L, :c_out], (0, 2, 1))
        return y, new_skip
    return y


# ------------------------- parameter construction ----------------------------


def _weight_norm(v):
    """PyTorch weight_norm (dim=0): w = g * v / ||v||, g initialized to ||v||."""
    norm = jnp.sqrt(jnp.sum(v * v, axis=(1, 2), keepdims=True))
    g = norm
    return g * v / norm


def init_params(key, n_inputs, n_outputs, kernel_size):
    ks = jax.random.split(key, 6)
    # PyTorch Conv1d weight layout: (C_out, C_in, K); init normal(0, 0.01).
    w1_t = _weight_norm(
        0.01 * jax.random.normal(ks[0], (n_outputs, n_inputs, kernel_size), jnp.float32))
    w2_t = _weight_norm(
        0.01 * jax.random.normal(ks[1], (n_outputs, n_outputs, kernel_size), jnp.float32))
    wd_t = 0.01 * jax.random.normal(ks[2], (n_outputs, n_inputs, 1), jnp.float32)
    b1 = 0.01 * jax.random.normal(ks[3], (n_outputs,), jnp.float32)
    b2 = 0.01 * jax.random.normal(ks[4], (n_outputs,), jnp.float32)
    bd = 0.01 * jax.random.normal(ks[5], (n_outputs,), jnp.float32)

    params = {
        # tap layout for the kernel: (K, C_in, C_out)
        "w1_taps": jnp.transpose(w1_t, (2, 1, 0)),
        "w2_taps": jnp.transpose(w2_t, (2, 1, 0)),
        "wd": jnp.transpose(wd_t[:, :, 0], (1, 0)),        # (C_in, C_out)
        "b1": b1.reshape(1, -1),
        "b2": b2.reshape(1, -1),
        "bd": bd.reshape(1, -1),
    }
    torch_layout = dict(w1=w1_t, w2=w2_t, wd=wd_t, b1=b1, b2=b2, bd=bd)
    return params, torch_layout


# ------------------------------- reference -----------------------------------


def torch_reference(x, p, *, pad, dil):
    """Plain-JAX reproduction of the PyTorch forward (NCL, eval mode)."""
    dn = ("NCH", "OIH", "NCH")
    y = jax.lax.conv_general_dilated(x, p["w1"], (1,), [(pad, pad)],
                                     rhs_dilation=(dil,), dimension_numbers=dn)
    y = jnp.maximum((y + p["b1"][None, :, None])[:, :, :-pad], 0.0)
    y = jax.lax.conv_general_dilated(y, p["w2"], (1,), [(pad, pad)],
                                     rhs_dilation=(dil,), dimension_numbers=dn)
    y = jnp.maximum((y + p["b2"][None, :, None])[:, :, :-pad], 0.0)
    res = jax.lax.conv_general_dilated(x, p["wd"], (1,), [(0, 0)],
                                       dimension_numbers=dn) + p["bd"][None, :, None]
    return jnp.maximum(y + res, 0.0), res


# --------------------------------- main ---------------------------------------

if __name__ == "__main__":
    N, C_IN, C_OUT, L = 2, 4, 8, 16
    KERNEL_SIZE, STRIDE, DILATION = 3, 1, 2
    PADDING = (KERNEL_SIZE - 1) * DILATION

    key = jax.random.PRNGKey(0)
    kx, kp, ksk = jax.random.split(key, 3)
    x = jax.random.normal(kx, (N, C_IN, L), jnp.float32)
    skip0 = jax.random.normal(ksk, (N, C_OUT, L), jnp.float32)
    params, torch_params = init_params(kp, C_IN, C_OUT, KERNEL_SIZE)

    # use_skips=False, small time tile to exercise the cross-tile causal windows.
    y = temporal_skip_block(x, params, kernel_size=KERNEL_SIZE,
                            dilation=DILATION, use_skips=False, tile_l=8)
    y = jax.block_until_ready(y)

    # use_skips=True, fresh skip (tuple output, VMEM-budgeted tile size).
    y2, new_skip = temporal_skip_block(x, params, kernel_size=KERNEL_SIZE,
                                       dilation=DILATION, use_skips=True)
    jax.block_until_ready((y2, new_skip))

    # use_skips=True with an existing skip: skip+res fused and aliased in place.
    y3, acc_skip = temporal_skip_block(x, params, kernel_size=KERNEL_SIZE,
                                       dilation=DILATION, use_skips=True,
                                       skip=skip0, tile_l=8)
    jax.block_until_ready((y3, acc_skip))

    # bf16 MXU path (f32 accumulation): looser tolerance.
    y_bf16 = temporal_skip_block(x, params, kernel_size=KERNEL_SIZE,
                                 dilation=DILATION, use_skips=False, tile_l=8,
                                 compute_dtype=jnp.bfloat16)
    y_bf16 = jax.block_until_ready(y_bf16)

    # correctness check against a plain-JAX reference of the PyTorch math
    y_ref, res_ref = torch_reference(x, torch_params, pad=PADDING, dil=DILATION)
    assert y.shape == (N, C_OUT, L)
    assert jnp.allclose(y, y_ref, atol=1e-5, rtol=1e-5)
    assert jnp.allclose(y2, y_ref, atol=1e-5, rtol=1e-5)
    assert jnp.allclose(y3, y_ref, atol=1e-5, rtol=1e-5)
    assert jnp.allclose(new_skip, res_ref, atol=1e-5, rtol=1e-5)
    assert jnp.allclose(acc_skip, skip0 + res_ref, atol=1e-5, rtol=1e-5)
    assert jnp.allclose(y_bf16, y_ref, atol=3e-2, rtol=3e-2)

    print("KERNEL_OK")
</pallas_src>

<mosaic_0001>
module attributes {stable_mosaic.version = 11 : i64} {
  func.func @_tcn_block_kernel(%arg0: i32, %arg1: i32, %arg2: memref<1x8x128xf32, #tpu.memory_space<vmem>>, %arg3: memref<384x128xf32, #tpu.memory_space<vmem>>, %arg4: memref<1x128xf32, #tpu.memory_space<vmem>>, %arg5: memref<384x128xf32, #tpu.memory_space<vmem>>, %arg6: memref<1x128xf32, #tpu.memory_space<vmem>>, %arg7: memref<128x128xf32, #tpu.memory_space<vmem>>, %arg8: memref<1x128xf32, #tpu.memory_space<vmem>>, %arg9: memref<1x8x128xf32, #tpu.memory_space<vmem>>, %arg10: memref<12x128xf32, #tpu.memory_space<vmem>>, %arg11: memref<12x128xf32, #tpu.memory_space<vmem>>) attributes {dimension_semantics = [#tpu.dimension_semantics<parallel>, #tpu.dimension_semantics<arbitrary>], iteration_bounds = array<i64: 2, 2>, scalar_prefetch = 0 : i64, scratch_operands = 2 : i64, tpu.core_type = #tpu.core_type<tc>, window_params = [{transform_indices = @transform_0, window_bounds = array<i64: 1, 8, 128>}, {pipeline_mode = #tpu.pipeline_mode<synchronous>, transform_indices = @transform_1, window_bounds = array<i64: 384, 128>}, {pipeline_mode = #tpu.pipeline_mode<synchronous>, transform_indices = @transform_2, window_bounds = array<i64: 1, 128>}, {pipeline_mode = #tpu.pipeline_mode<synchronous>, transform_indices = @transform_3, window_bounds = array<i64: 384, 128>}, {pipeline_mode = #tpu.pipeline_mode<synchronous>, transform_indices = @transform_4, window_bounds = array<i64: 1, 128>}, {pipeline_mode = #tpu.pipeline_mode<synchronous>, transform_indices = @transform_5, window_bounds = array<i64: 128, 128>}, {pipeline_mode = #tpu.pipeline_mode<synchronous>, transform_indices = @transform_6, window_bounds = array<i64: 1, 128>}, {transform_indices = @transform_7, window_bounds = array<i64: 1, 8, 128>}]} {
    %c0_i32 = arith.constant 0 : i32
    %0 = arith.cmpi eq, %arg1, %c0_i32 : i32
    %1 = arith.extui %0 : i1 to i32
    %c0_i32_0 = arith.constant 0 : i32
    %2 = arith.cmpi ne, %1, %c0_i32_0 : i32
    scf.if %2 {
      %cst_44 = arith.constant 0.000000e+00 : f32
      %44 = vector.broadcast %cst_44 : f32 to vector<4x128xf32>
      %c0_45 = arith.constant 0 : index
      %c0_46 = arith.constant 0 : index
      %45 = vector.load %arg10[%c0_45, %c0_46] : memref<12x128xf32, #tpu.memory_space<vmem>>, vector<4x128xf32>
      tpu.vector_store %arg10[%c0_45, %c0_46], %44 {strides = array<i32>} : memref<12x128xf32, #tpu.memory_space<vmem>>, vector<4x128xf32>,
      %cst_47 = arith.constant 0.000000e+00 : f32
      %46 = vector.broadcast %cst_47 : f32 to vector<4x128xf32>
      %c0_48 = arith.constant 0 : index
      %c0_49 = arith.constant 0 : index
      %47 = vector.load %arg11[%c0_48, %c0_49] : memref<12x128xf32, #tpu.memory_space<vmem>>, vector<4x128xf32>
      tpu.vector_store %arg11[%c0_48, %c0_49], %46 {strides = array<i32>} : memref<12x128xf32, #tpu.memory_space<vmem>>, vector<4x128xf32>,
    } else {
    }
    %c0 = arith.constant 0 : index
    %c0_1 = arith.constant 0 : index
    %c0_2 = arith.constant 0 : index
    %3 = vector.load %arg2[%c0, %c0_1, %c0_2] : memref<1x8x128xf32, #tpu.memory_space<vmem>>, vector<1x8x128xf32>
    %4 = vector.shape_cast %3 : vector<1x8x128xf32> to vector<8x128xf32>
    %c4 = arith.constant 4 : index
    %c0_3 = arith.constant 0 : index
    %5 = vector.load %arg10[%c4, %c0_3] : memref<12x128xf32, #tpu.memory_space<vmem>>, vector<8x128xf32>
    tpu.vector_store %arg10[%c4, %c0_3], %4 {strides = array<i32>} : memref<12x128xf32, #tpu.memory_space<vmem>>, vector<8x128xf32>,
    %c0_4 = arith.constant 0 : index
    %c0_5 = arith.constant 0 : index
    %6 = vector.load %arg10[%c0_4, %c0_5] : memref<12x128xf32, #tpu.memory_space<vmem>>, vector<8x128xf32>
    %c2 = arith.constant 2 : index
    %c0_6 = arith.constant 0 : index
    %7 = vector.load %arg10[%c2, %c0_6] : memref<12x128xf32, #tpu.memory_space<vmem>>, vector<8x128xf32>
    %c4_7 = arith.constant 4 : index
    %c0_8 = arith.constant 0 : index
    %8 = vector.load %arg10[%c4_7, %c0_8] : memref<12x128xf32, #tpu.memory_space<vmem>>, vector<8x128xf32>
    %9 = tpu.concatenate %6, %7, %8 in 1 : vector<8x128xf32>, vector<8x128xf32>, vector<8x128xf32> -> vector<8x384xf32>
    %c0_9 = arith.constant 0 : index
    %c0_10 = arith.constant 0 : index
    %10 = vector.load %arg3[%c0_9, %c0_10] : memref<384x128xf32, #tpu.memory_space<vmem>>, vector<384x128xf32>
    %cst = arith.constant dense<0.000000e+00> : vector<8x128xf32>
    %11 = tpu.matmul %9, %10, %cst {dimension_numbers = #tpu.dot_dimension_numbers<[1], [0], [0], [1], [0, 0, 1, 1], [], []>} : vector<8x384xf32>, vector<384x128xf32>, vector<8x128xf32> -> vector<8x128xf32>
    %c0_11 = arith.constant 0 : index
    %c0_12 = arith.constant 0 : index
    %12 = vector.load %arg4[%c0_11, %c0_12] : memref<1x128xf32, #tpu.memory_space<vmem>>, vector<1x128xf32>
    %13 = vector.broadcast %12 : vector<1x128xf32> to vector<8x128xf32>
    %14 = arith.addf %11, %13 : vector<8x128xf32>
    %cst_13 = arith.constant 0.000000e+00 : f32
    %15 = vector.broadcast %cst_13 : f32 to vector<8x128xf32>
    %16 = arith.maximumf %14, %15 : vector<8x128xf32>
    %c4_14 = arith.constant 4 : index
    %c0_15 = arith.constant 0 : index
    %17 = vector.load %arg11[%c4_14, %c0_15] : memref<12x128xf32, #tpu.memory_space<vmem>>, vector<8x128xf32>
    tpu.vector_store %arg11[%c4_14, %c0_15], %16 {strides = array<i32>} : memref<12x128xf32, #tpu.memory_space<vmem>>, vector<8x128xf32>,
    %c0_16 = arith.constant 0 : index
    %c0_17 = arith.constant 0 : index
    %18 = vector.load %arg11[%c0_16, %c0_17] : memref<12x128xf32, #tpu.memory_space<vmem>>, vector<8x128xf32>
    %c2_18 = arith.constant 2 : index
    %c0_19 = arith.constant 0 : index
    %19 = vector.load %arg11[%c2_18, %c0_19] : memref<12x128xf32, #tpu.memory_space<vmem>>, vector<8x128xf32>
    %c4_20 = arith.constant 4 : index
    %c0_21 = arith.constant 0 : index
    %20 = vector.load %arg11[%c4_20, %c0_21] : memref<12x128xf32, #tpu.memory_space<vmem>>, vector<8x128xf32>
    %21 = tpu.concatenate %18, %19, %20 in 1 : vector<8x128xf32>, vector<8x128xf32>, vector<8x128xf32> -> vector<8x384xf32>
    %c0_22 = arith.constant 0 : index
    %c0_23 = arith.constant 0 : index
    %22 = vector.load %arg5[%c0_22, %c0_23] : memref<384x128xf32, #tpu.memory_space<vmem>>, vector<384x128xf32>
    %cst_24 = arith.constant dense<0.000000e+00> : vector<8x128xf32>
    %23 = tpu.matmul %21, %22, %cst_24 {dimension_numbers = #tpu.dot_dimension_numbers<[1], [0], [0], [1], [0, 0, 1, 1], [], []>} : vector<8x384xf32>, vector<384x128xf32>, vector<8x128xf32> -> vector<8x128xf32>
    %c0_25 = arith.constant 0 : index
    %c0_26 = arith.constant 0 : index
    %24 = vector.load %arg6[%c0_25, %c0_26] : memref<1x128xf32, #tpu.memory_space<vmem>>, vector<1x128xf32>
    %25 = vector.broadcast %24 : vector<1x128xf32> to vector<8x128xf32>
    %26 = arith.addf %23, %25 : vector<8x128xf32>
    %cst_27 = arith.constant 0.000000e+00 : f32
    %27 = vector.broadcast %cst_27 : f32 to vector<8x128xf32>
    %28 = arith.maximumf %26, %27 : vector<8x128xf32>
    %c0_28 = arith.constant 0 : index
    %c0_29 = arith.constant 0 : index
    %29 = vector.load %arg7[%c0_28, %c0_29] : memref<128x128xf32, #tpu.memory_space<vmem>>, vector<128x128xf32>
    %cst_30 = arith.constant dense<0.000000e+00> : vector<8x128xf32>
    %30 = tpu.matmul %4, %29, %cst_30 {dimension_numbers = #tpu.dot_dimension_numbers<[1], [0], [0], [1], [0, 0, 1, 1], [], []>} : vector<8x128xf32>, vector<128x128xf32>, vector<8x128xf32> -> vector<8x128xf32>
    %c0_31 = arith.constant 0 : index
    %c0_32 = arith.constant 0 : index
    %31 = vector.load %arg8[%c0_31, %c0_32] : memref<1x128xf32, #tpu.memory_space<vmem>>, vector<1x128xf32>
    %32 = vector.broadcast %31 : vector<1x128xf32> to vector<8x128xf32>
    %33 = arith.addf %30, %32 : vector<8x128xf32>
    %34 = arith.addf %28, %33 : vector<8x128xf32>
    %cst_33 = arith.constant 0.000000e+00 : f32
    %35 = vector.broadcast %cst_33 : f32 to vector<8x128xf32>
    %36 = arith.maximumf %34, %35 : vector<8x128xf32>
    %c0_34 = arith.constant 0 : index
    %c0_35 = arith.constant 0 : index
    %c0_36 = arith.constant 0 : index
    %37 = vector.load %arg9[%c0_34, %c0_35, %c0_36] : memref<1x8x128xf32, #tpu.memory_space<vmem>>, vector<1x8x128xf32>
    %38 = vector.shape_cast %37 : vector<1x8x128xf32> to vector<8x128xf32>
    %39 = vector.shape_cast %36 : vector<8x128xf32> to vector<1x8x128xf32>
    tpu.vector_store %arg9[%c0_34, %c0_35, %c0_36], %39 {strides = array<i32>} : memref<1x8x128xf32, #tpu.memory_space<vmem>>, vector<1x8x128xf32>,
    %c8 = arith.constant 8 : index
    %c0_37 = arith.constant 0 : index
    %40 = vector.load %arg10[%c8, %c0_37] : memref<12x128xf32, #tpu.memory_space<vmem>>, vector<4x128xf32>
    %c0_38 = arith.constant 0 : index
    %c0_39 = arith.constant 0 : index
    %41 = vector.load %arg10[%c0_38, %c0_39] : memref<12x128xf32, #tpu.memory_space<vmem>>, vector<4x128xf32>
    tpu.vector_store %arg10[%c0_38, %c0_39], %40 {strides = array<i32>} : memref<12x128xf32, #tpu.memory_space<vmem>>, vector<4x128xf32>,
    %c8_40 = arith.constant 8 : index
    %c0_41 = arith.constant 0 : index
    %42 = vector.load %arg11[%c8_40, %c0_41] : memref<12x128xf32, #tpu.memory_space<vmem>>, vector<4x128xf32>
    %c0_42 = arith.constant 0 : index
    %c0_43 = arith.constant 0 : index
    %43 = vector.load %arg11[%c0_42, %c0_43] : memref<12x128xf32, #tpu.memory_space<vmem>>, vector<4x128xf32>
    tpu.vector_store %arg11[%c0_42, %c0_43], %42 {strides = array<i32>} : memref<12x128xf32, #tpu.memory_space<vmem>>, vector<4x128xf32>,
    return
  }
  func.func @transform_0(%arg0: i32, %arg1: i32) -> (i32, i32, i32) {
    %c0_i32 = arith.constant 0 : i32
    %c0_i32_0 = arith.constant 0 : i32
    return %arg0, %arg1, %c0_i32 : i32, i32, i32
  }
  func.func @transform_1(%arg0: i32, %arg1: i32) -> (i32, i32) {
    %c0_i32 = arith.constant 0 : i32
    %c0_i32_0 = arith.constant 0 : i32
    %c0_i32_1 = arith.constant 0 : i32
    return %c0_i32, %c0_i32_0 : i32, i32
  }
  func.func @transform_2(%arg0: i32, %arg1: i32) -> (i32, i32) {
    %c0_i32 = arith.constant 0 : i32
    %c0_i32_0 = arith.constant 0 : i32
    %c0_i32_1 = arith.constant 0 : i32
    return %c0_i32, %c0_i32_0 : i32, i32
  }
  func.func @transform_3(%arg0: i32, %arg1: i32) -> (i32, i32) {
    %c0_i32 = arith.constant 0 : i32
    %c0_i32_0 = arith.constant 0 : i32
    %c0_i32_1 = arith.constant 0 : i32
    return %c0_i32, %c0_i32_0 : i32, i32
  }
  func.func @transform_4(%arg0: i32, %arg1: i32) -> (i32, i32) {
    %c0_i32 = arith.constant 0 : i32
    %c0_i32_0 = arith.constant 0 : i32
    %c0_i32_1 = arith.constant 0 : i32
    return %c0_i32, %c0_i32_0 : i32, i32
  }
  func.func @transform_5(%arg0: i32, %arg1: i32) -> (i32, i32) {
    %c0_i32 = arith.constant 0 : i32
    %c0_i32_0 = arith.constant 0 : i32
    %c0_i32_1 = arith.constant 0 : i32
    return %c0_i32, %c0_i32_0 : i32, i32
  }
  func.func @transform_6(%arg0: i32, %arg1: i32) -> (i32, i32) {
    %c0_i32 = arith.constant 0 : i32
    %c0_i32_0 = arith.constant 0 : i32
    %c0_i32_1 = arith.constant 0 : i32
    return %c0_i32, %c0_i32_0 : i32, i32
  }
  func.func @transform_7(%arg0: i32, %arg1: i32) -> (i32, i32, i32) {
    %c0_i32 = arith.constant 0 : i32
    %c0_i32_0 = arith.constant 0 : i32
    return %arg0, %arg1, %c0_i32 : i32, i32, i32
  }
}

module attributes {stable_mosaic.version = 11 : i64} {
  func.func @_tcn_block_kernel(%arg0: i32, %arg1: i32, %arg2: memref<1x8x128xf32, #tpu.memory_space<vmem>>, %arg3: memref<384x128xf32, #tpu.memory_space<vmem>>, %arg4: memref<1x128xf32, #tpu.memory_space<vmem>>, %arg5: memref<384x128xf32, #tpu.memory_space<vmem>>, %arg6: memref<1x128xf32, #tpu.memory_space<vmem>>, %arg7: memref<128x128xf32, #tpu.memory_space<vmem>>, %arg8: memref<1x128xf32, #tpu.memory_space<vmem>>, %arg9: memref<1x8x128xf32, #tpu.memory_space<vmem>>, %arg10: memref<12x128xf32, #tpu.memory_space<vmem>>, %arg11: memref<12x128xf32, #tpu.memory_space<vmem>>) attributes {dimension_semantics = [#tpu.dimension_semantics<parallel>, #tpu.dimension_semantics<arbitrary>], iteration_bounds = array<i64: 2, 2>, scalar_prefetch = 0 : i64, scratch_operands = 2 : i64, tpu.core_type = #tpu.core_type<tc>, window_params = [{transform_indices = @transform_0, window_bounds = array<i64: 1, 8, 128>}, {pipeline_mode = #tpu.pipeline_mode<synchronous>, transform_indices = @transform_1, window_bounds = array<i64: 384, 128>}, {pipeline_mode = #tpu.pipeline_mode<synchronous>, transform_indices = @transform_2, window_bounds = array<i64: 1, 128>}, {pipeline_mode = #tpu.pipeline_mode<synchronous>, transform_indices = @transform_3, window_bounds = array<i64: 384, 128>}, {pipeline_mode = #tpu.pipeline_mode<synchronous>, transform_indices = @transform_4, window_bounds = array<i64: 1, 128>}, {pipeline_mode = #tpu.pipeline_mode<synchronous>, transform_indices = @transform_5, window_bounds = array<i64: 128, 128>}, {pipeline_mode = #tpu.pipeline_mode<synchronous>, transform_indices = @transform_6, window_bounds = array<i64: 1, 128>}, {transform_indices = @transform_7, window_bounds = array<i64: 1, 8, 128>}]} {
    %c0_i32 = arith.constant 0 : i32
    %0 = arith.cmpi eq, %arg1, %c0_i32 : i32
    %1 = arith.extui %0 : i1 to i32
    %c0_i32_0 = arith.constant 0 : i32
    %2 = arith.cmpi ne, %1, %c0_i32_0 : i32
    scf.if %2 {
      %cst_44 = arith.constant 0.000000e+00 : f32
      %44 = vector.broadcast %cst_44 : f32 to vector<4x128xf32>
      %c0_45 = arith.constant 0 : index
      %c0_46 = arith.constant 0 : index
      %45 = vector.load %arg10[%c0_45, %c0_46] : memref<12x128xf32, #tpu.memory_space<vmem>>, vector<4x128xf32>
      tpu.vector_store %arg10[%c0_45, %c0_46], %44 {strides = array<i32>} : memref<12x128xf32, #tpu.memory_space<vmem>>, vector<4x128xf32>,
      %cst_47 = arith.constant 0.000000e+00 : f32
      %46 = vector.broadcast %cst_47 : f32 to vector<4x128xf32>
      %c0_48 = arith.constant 0 : index
      %c0_49 = arith.constant 0 : index
      %47 = vector.load %arg11[%c0_48, %c0_49] : memref<12x128xf32, #tpu.memory_space<vmem>>, vector<4x128xf32>
      tpu.vector_store %arg11[%c0_48, %c0_49], %46 {strides = array<i32>} : memref<12x128xf32, #tpu.memory_space<vmem>>, vector<4x128xf32>,
    } else {
    }
    %c0 = arith.constant 0 : index
    %c0_1 = arith.constant 0 : index
    %c0_2 = arith.constant 0 : index
    %3 = vector.load %arg2[%c0, %c0_1, %c0_2] : memref<1x8x128xf32, #tpu.memory_space<vmem>>, vector<1x8x128xf32>
    %4 = vector.shape_cast %3 : vector<1x8x128xf32> to vector<8x128xf32>
    %c4 = arith.constant 4 : index
    %c0_3 = arith.constant 0 : index
    %5 = vector.load %arg10[%c4, %c0_3] : memref<12x128xf32, #tpu.memory_space<vmem>>, vector<8x128xf32>
    tpu.vector_store %arg10[%c4, %c0_3], %4 {strides = array<i32>} : memref<12x128xf32, #tpu.memory_space<vmem>>, vector<8x128xf32>,
    %c0_4 = arith.constant 0 : index
    %c0_5 = arith.constant 0 : index
    %6 = vector.load %arg10[%c0_4, %c0_5] : memref<12x128xf32, #tpu.memory_space<vmem>>, vector<8x128xf32>
    %c2 = arith.constant 2 : index
    %c0_6 = arith.constant 0 : index
    %7 = vector.load %arg10[%c2, %c0_6] : memref<12x128xf32, #tpu.memory_space<vmem>>, vector<8x128xf32>
    %c4_7 = arith.constant 4 : index
    %c0_8 = arith.constant 0 : index
    %8 = vector.load %arg10[%c4_7, %c0_8] : memref<12x128xf32, #tpu.memory_space<vmem>>, vector<8x128xf32>
    %9 = tpu.concatenate %6, %7, %8 in 1 : vector<8x128xf32>, vector<8x128xf32>, vector<8x128xf32> -> vector<8x384xf32>
    %c0_9 = arith.constant 0 : index
    %c0_10 = arith.constant 0 : index
    %10 = vector.load %arg3[%c0_9, %c0_10] : memref<384x128xf32, #tpu.memory_space<vmem>>, vector<384x128xf32>
    %cst = arith.constant dense<0.000000e+00> : vector<8x128xf32>
    %11 = tpu.matmul %9, %10, %cst {dimension_numbers = #tpu.dot_dimension_numbers<[1], [0], [0], [1], [0, 0, 1, 1], [], []>} : vector<8x384xf32>, vector<384x128xf32>, vector<8x128xf32> -> vector<8x128xf32>
    %c0_11 = arith.constant 0 : index
    %c0_12 = arith.constant 0 : index
    %12 = vector.load %arg4[%c0_11, %c0_12] : memref<1x128xf32, #tpu.memory_space<vmem>>, vector<1x128xf32>
    %13 = vector.broadcast %12 : vector<1x128xf32> to vector<8x128xf32>
    %14 = arith.addf %11, %13 : vector<8x128xf32>
    %cst_13 = arith.constant 0.000000e+00 : f32
    %15 = vector.broadcast %cst_13 : f32 to vector<8x128xf32>
    %16 = arith.maximumf %14, %15 : vector<8x128xf32>
    %c4_14 = arith.constant 4 : index
    %c0_15 = arith.constant 0 : index
    %17 = vector.load %arg11[%c4_14, %c0_15] : memref<12x128xf32, #tpu.memory_space<vmem>>, vector<8x128xf32>
    tpu.vector_store %arg11[%c4_14, %c0_15], %16 {strides = array<i32>} : memref<12x128xf32, #tpu.memory_space<vmem>>, vector<8x128xf32>,
    %c0_16 = arith.constant 0 : index
    %c0_17 = arith.constant 0 : index
    %18 = vector.load %arg11[%c0_16, %c0_17] : memref<12x128xf32, #tpu.memory_space<vmem>>, vector<8x128xf32>
    %c2_18 = arith.constant 2 : index
    %c0_19 = arith.constant 0 : index
    %19 = vector.load %arg11[%c2_18, %c0_19] : memref<12x128xf32, #tpu.memory_space<vmem>>, vector<8x128xf32>
    %c4_20 = arith.constant 4 : index
    %c0_21 = arith.constant 0 : index
    %20 = vector.load %arg11[%c4_20, %c0_21] : memref<12x128xf32, #tpu.memory_space<vmem>>, vector<8x128xf32>
    %21 = tpu.concatenate %18, %19, %20 in 1 : vector<8x128xf32>, vector<8x128xf32>, vector<8x128xf32> -> vector<8x384xf32>
    %c0_22 = arith.constant 0 : index
    %c0_23 = arith.constant 0 : index
    %22 = vector.load %arg5[%c0_22, %c0_23] : memref<384x128xf32, #tpu.memory_space<vmem>>, vector<384x128xf32>
    %cst_24 = arith.constant dense<0.000000e+00> : vector<8x128xf32>
    %23 = tpu.matmul %21, %22, %cst_24 {dimension_numbers = #tpu.dot_dimension_numbers<[1], [0], [0], [1], [0, 0, 1, 1], [], []>} : vector<8x384xf32>, vector<384x128xf32>, vector<8x128xf32> -> vector<8x128xf32>
    %c0_25 = arith.constant 0 : index
    %c0_26 = arith.constant 0 : index
    %24 = vector.load %arg6[%c0_25, %c0_26] : memref<1x128xf32, #tpu.memory_space<vmem>>, vector<1x128xf32>
    %25 = vector.broadcast %24 : vector<1x128xf32> to vector<8x128xf32>
    %26 = arith.addf %23, %25 : vector<8x128xf32>
    %cst_27 = arith.constant 0.000000e+00 : f32
    %27 = vector.broadcast %cst_27 : f32 to vector<8x128xf32>
    %28 = arith.maximumf %26, %27 : vector<8x128xf32>
    %c0_28 = arith.constant 0 : index
    %c0_29 = arith.constant 0 : index
    %29 = vector.load %arg7[%c0_28, %c0_29] : memref<128x128xf32, #tpu.memory_space<vmem>>, vector<128x128xf32>
    %cst_30 = arith.constant dense<0.000000e+00> : vector<8x128xf32>
    %30 = tpu.matmul %4, %29, %cst_30 {dimension_numbers = #tpu.dot_dimension_numbers<[1], [0], [0], [1], [0, 0, 1, 1], [], []>} : vector<8x128xf32>, vector<128x128xf32>, vector<8x128xf32> -> vector<8x128xf32>
    %c0_31 = arith.constant 0 : index
    %c0_32 = arith.constant 0 : index
    %31 = vector.load %arg8[%c0_31, %c0_32] : memref<1x128xf32, #tpu.memory_space<vmem>>, vector<1x128xf32>
    %32 = vector.broadcast %31 : vector<1x128xf32> to vector<8x128xf32>
    %33 = arith.addf %30, %32 : vector<8x128xf32>
    %34 = arith.addf %28, %33 : vector<8x128xf32>
    %cst_33 = arith.constant 0.000000e+00 : f32
    %35 = vector.broadcast %cst_33 : f32 to vector<8x128xf32>
    %36 = arith.maximumf %34, %35 : vector<8x128xf32>
    %c0_34 = arith.constant 0 : index
    %c0_35 = arith.constant 0 : index
    %c0_36 = arith.constant 0 : index
    %37 = vector.load %arg9[%c0_34, %c0_35, %c0_36] : memref<1x8x128xf32, #tpu.memory_space<vmem>>, vector<1x8x128xf32>
    %38 = vector.shape_cast %37 : vector<1x8x128xf32> to vector<8x128xf32>
    %39 = vector.shape_cast %36 : vector<8x128xf32> to vector<1x8x128xf32>
    tpu.vector_store %arg9[%c0_34, %c0_35, %c0_36], %39 {strides = array<i32>} : memref<1x8x128xf32, #tpu.memory_space<vmem>>, vector<1x8x128xf32>,
    %c8 = arith.constant 8 : index
    %c0_37 = arith.constant 0 : index
    %40 = vector.load %arg10[%c8, %c0_37] : memref<12x128xf32, #tpu.memory_space<vmem>>, vector<4x128xf32>
    %c0_38 = arith.constant 0 : index
    %c0_39 = arith.constant 0 : index
    %41 = vector.load %arg10[%c0_38, %c0_39] : memref<12x128xf32, #tpu.memory_space<vmem>>, vector<4x128xf32>
    tpu.vector_store %arg10[%c0_38, %c0_39], %40 {strides = array<i32>} : memref<12x128xf32, #tpu.memory_space<vmem>>, vector<4x128xf32>,
    %c8_40 = arith.constant 8 : index
    %c0_41 = arith.constant 0 : index
    %42 = vector.load %arg11[%c8_40, %c0_41] : memref<12x128xf32, #tpu.memory_space<vmem>>, vector<4x128xf32>
    %c0_42 = arith.constant 0 : index
    %c0_43 = arith.constant 0 : index
    %43 = vector.load %arg11[%c0_42, %c0_43] : memref<12x128xf32, #tpu.memory_space<vmem>>, vector<4x128xf32>
    tpu.vector_store %arg11[%c0_42, %c0_43], %42 {strides = array<i32>} : memref<12x128xf32, #tpu.memory_space<vmem>>, vector<4x128xf32>,
    return
  }
  func.func @transform_0(%arg0: i32, %arg1: i32) -> (i32, i32, i32) {
    %c0_i32 = arith.constant 0 : i32
    %c0_i32_0 = arith.constant 0 : i32
    return %arg0, %arg1, %c0_i32 : i32, i32, i32
  }
  func.func @transform_1(%arg0: i32, %arg1: i32) -> (i32, i32) {
    %c0_i32 = arith.constant 0 : i32
    %c0_i32_0 = arith.constant 0 : i32
    %c0_i32_1 = arith.constant 0 : i32
    return %c0_i32, %c0_i32_0 : i32, i32
  }
  func.func @transform_2(%arg0: i32, %arg1: i32) -> (i32, i32) {
    %c0_i32 = arith.constant 0 : i32
    %c0_i32_0 = arith.constant 0 : i32
    %c0_i32_1 = arith.constant 0 : i32
    return %c0_i32, %c0_i32_0 : i32, i32
  }
  func.func @transform_3(%arg0: i32, %arg1: i32) -> (i32, i32) {
    %c0_i32 = arith.constant 0 : i32
    %c0_i32_0 = arith.constant 0 : i32
    %c0_i32_1 = arith.constant 0 : i32
    return %c0_i32, %c0_i32_0 : i32, i32
  }
  func.func @transform_4(%arg0: i32, %arg1: i32) -> (i32, i32) {
    %c0_i32 = arith.constant 0 : i32
    %c0_i32_0 = arith.constant 0 : i32
    %c0_i32_1 = arith.constant 0 : i32
    return %c0_i32, %c0_i32_0 : i32, i32
  }
  func.func @transform_5(%arg0: i32, %arg1: i32) -> (i32, i32) {
    %c0_i32 = arith.constant 0 : i32
    %c0_i32_0 = arith.constant 0 : i32
    %c0_i32_1 = arith.constant 0 : i32
    return %c0_i32, %c0_i32_0 : i32, i32
  }
  func.func @transform_6(%arg0: i32, %arg1: i32) -> (i32, i32) {
    %c0_i32 = arith.constant 0 : i32
    %c0_i32_0 = arith.constant 0 : i32
    %c0_i32_1 = arith.constant 0 : i32
    return %c0_i32, %c0_i32_0 : i32, i32
  }
  func.func @transform_7(%arg0: i32, %arg1: i32) -> (i32, i32, i32) {
    %c0_i32 = arith.constant 0 : i32
    %c0_i32_0 = arith.constant 0 : i32
    return %arg0, %arg1, %c0_i32 : i32, i32, i32
  }
}

</mosaic_0001>

<bundles_post_ra>
// kernel: tpu_custom_call.1
= control target key start
LH: loop header
LB: loop body
LE: loop exit
PB: predicated region body
PF: predicated region fallthrough
CT: control target
= control target key end

     0   :  { %s2132_s0 = inlined_call_operand.hbm [shape: f32[2,16,128], index: 0, kind: input, shape index: {}]   ;;  %s2133_s1 = inlined_call_operand.hbm [shape: f32[384,128], index: 1, kind: input, shape index: {}]   ;;  %s2134_s2 = inlined_call_operand.vmem [shape: f32[1,128], index: 2, kind: input, shape index: {}]   ;;  %s2135_s3 = inlined_call_operand.hbm [shape: f32[384,128], index: 3, kind: input, shape index: {}]   ;;  %s2136_s4 = inlined_call_operand.vmem [shape: f32[1,128], index: 4, kind: input, shape index: {}]   ;;  %s2137_s5 = inlined_call_operand.hbm [shape: f32[128,128], index: 5, kind: input, shape index: {}]   ;;  %s2138_s6 = inlined_call_operand.vmem [shape: f32[1,128], index: 6, kind: input, shape index: {}]   ;;  %s2139_s7 = inlined_call_operand.hbm [shape: f32[2,16,128], index: 7, kind: output, shape index: {}]  }
   0x1   :  { %2147 = sst [smem:[#allocation20_spill]] %s2133_s1 }
   0x2   :  { %2148 = sst [smem:[#allocation21_spill]] %s2135_s3 }
   0x3   :  { %2149 = sst [smem:[#allocation22_spill]] %s2136_s4 }
   0x4   :  { %2150 = sst [smem:[#allocation23_spill]] %s2138_s6 }
   0x5   :  { %2151 = sst [smem:[#allocation24_spill]] %s2139_s7 }
   0x6   :  { %12 = vsyncpa [#allocation5], 0 }
   0x7   :  { %14 = vsyncpa [#allocation5 + $0x1], 0 }
   0x8   :  { %15 = vsyncpa [#allocation8], 0 }
   0x9   :  { %16 = vsyncpa [#allocation11], 0 }
   0xa   :  { %17 = vsyncpa [#allocation6], 0 }
   0xb   :  { %19 = vsyncpa [#allocation6 + $0x1], 0  ;;  %s1768_s24 = smov 0   ;;  %s1770_s25 = smov 0  }
   0xc   :  { %s1772_s26 = smov 0   ;;  %s1774_s27 = smov 0  }
   0xd   :  { %s1776_s28 = smov 0   ;;  %s1778_s29 = smov 0  }
   0xe   :  { %s1780_s30 = smov 0   ;;  %s1782_s8 = smov 0  }
   0xf LB: > { %2152 = sst [smem:[#allocation17_spill]] %s1687_s24  ;;  %s993_s9 = sadd.s32 4294967295, %s1715_s8   ;;  %s1715_s8 = sphi %s1782_s8, %s25_s8   ;;  %s1711_s30 = sphi %s1780_s30, %s2185_s30   ;;  %s1707_s29 = sphi %s1778_s29, %s2184_s29   ;;  %s1703_s28 = sphi %s1776_s28, %s2183_s28   ;;  %s1699_s27 = sphi %s1774_s27, %s2182_s27   ;;  %s1695_s26 = sphi %s1772_s26, %s2181_s26   ;;  %s1691_s25 = sphi %s1770_s25, %s2180_s25   ;;  %s1687_s24 = sphi %s1768_s24, %s2179_s24  }
  0x10   : > { %2153 = sst [smem:[#allocation18_spill]] %s1703_s28  ;;  %s994_s10 = sadd.s32 4294967294, %s1715_s8  }
  0x11   : > { %p59_p0 = scmp.ne.s32.totalorder %s1691_s25, %s1687_s24  ;;  %p1812_p1 = scmp.eq.s32.totalorder %s993_s9, 0 }
  0x12   : > { %p1816_p2 = scmp.eq.s32.totalorder %s993_s9, 3  ;;  %p217_p3 = scmp.eq.s32.totalorder %s994_s10, 3 }
  0x13   : > { %s2154_s11 = scalar_select %p1812_p1, 1, 0 }
  0x14   : > { %s2155_s12 = scalar_select %p1816_p2, 1, 0 }
  0x15   : > { %p1822_p4 = por %p1812_p1, %p59_p0  ;;  %p995_p5 = scmp.ge.s32.totalorder %s1715_s8, 1 }
  0x16   : > { %p1827_p6 = por %p217_p3, %p59_p0  ;;  %p224_p7 = scmp.lt.s32.totalorder %s1715_s8, 5 }
  0x17   : > { %s2156_s13 = scalar_select %p1822_p4, 1, 0 }
  0x18   : > { %s2157_s14 = scalar_select %p1827_p6, 1, 0 }
  0x19   : > { %p1832_p8 = pnand %p995_p5, %p224_p7  ;;  %s1717_s16 = smov [#allocation7]  }
  0x1a   : > { %2158 = sst [smem:[#allocation19_spill]] %s2157_s14  ;;  %s236_s17 = sshll.u32 %s1717_s16, 4  ;;  %s1836_s17 = int_to_ptr.vmem [resolvable:$true] %s236_s17 }
  0x1b   : > { %s2159_s15 = scalar_select %p1832_p8, 1, 0 }
  0x1c   : > { %p1396_p9 = pneg %p1832_p8  ;;  %s1718_s19 = smov [#allocation9]  }
  0x1d   : > { %s252_s20 = sshll.u32 %s1718_s19, 4  ;;  %s1719_s21 = smov [#allocation10]   ;;  %s1846_s20 = int_to_ptr.vmem [resolvable:$true] %s252_s20 }
  0x1e   : > { %p1842_p10 = pnand %p1396_p9, %p1812_p1  ;;  %s1848_s22 = sshll.u32 %s1719_s21, 4  ;;  %s269_s22 = int_to_ptr.vmem [resolvable:$true] %s1848_s22 }
  0x1f   : > { %s2161_s1 = sld [smem:[#allocation20_spill]] }
  0x20   : > { %p1858_p12 = pneg %p1842_p10 }
  0x25   : > { %s1495_s10 = scalar_lea.hbm %s2161_s1, 6144 }
  0x26   : > { %p1496_p11 = scmp.ne.s32.totalorder %s2161_s1, %s1495_s10  ;;  %p1502_p3 = scmp.lt.u32.totalorder %s1495_s10, %s2161_s1 }
  0x28   : > { %p1498_p13 = pnand %p1858_p12, %p1496_p11 }
  0x2a   : > { %p1499_p0 = pneg %p1498_p13 }
  0x2c   : > { %p1504_p5 = pnand %p1502_p3, %p1499_p0 }
  0x2e   : > { %1507 = shalt.err (!%p1504_p5)
}
  0x2f   : > { %s1508_s14 = scalar_lea.vmem %s1836_s17, 6144  ;;  %p1516_p1 = scmp.lt.s32.totalorder %s1836_s17, %s1836_s17 }
  0x30   : > { %p1509_p7 = scmp.ne.s32.totalorder %s1836_s17, %s1508_s14  ;;  %p1517_p4 = scmp.lt.s32.totalorder %s1508_s14, %s1508_s14 }
  0x32   : > { %p1511_p9 = pnand %p1509_p7, %p1858_p12  ;;  %p1518_p11 = por %p1517_p4, %p1516_p1 }
  0x34   : > { %p1512_p6 = pneg %p1511_p9 }
  0x36   : > { %p1519_p13 = pnand %p1518_p11, %p1512_p6 }
  0x38   : > { %1522 = shalt.err (!%p1519_p13)
}
  0x39   : > { %s1720_s23 = smov 128   ;;  %s1721_s9 = smov 8  }
  0x3a   : > { %1399 = dma.hbm_to_vmem [thread:$0]  (!%p1842_p10), %s2161_s1, 6144, %s1836_s17, [#allocation8], %s1720_s23, %s1720_s23, %s1721_s9  }
  0x3b   : > { %s2163_s3 = sld [smem:[#allocation21_spill]] }
  0x41   : > { %s1523_s14 = scalar_lea.hbm %s2163_s3, 6144 }
  0x42   : > { %p1524_p1 = scmp.ne.s32.totalorder %s2163_s3, %s1523_s14  ;;  %p1530_p0 = scmp.lt.u32.totalorder %s1523_s14, %s2163_s3 }
  0x44   : > { %p1526_p4 = pnand %p1524_p1, %p1858_p12 }
  0x46   : > { %p1527_p6 = pneg %p1526_p4 }
  0x48   : > { %p1532_p3 = pnand %p1530_p0, %p1527_p6 }
  0x4a   : > { %1535 = shalt.err (!%p1532_p3)
}
  0x4b   : > { %s1536_s17 = scalar_lea.vmem %s1846_s20, 6144  ;;  %p1544_p11 = scmp.lt.s32.totalorder %s1846_s20, %s1846_s20 }
  0x4c   : > { %p1537_p5 = scmp.ne.s32.totalorder %s1846_s20, %s1536_s17  ;;  %p1545_p13 = scmp.lt.s32.totalorder %s1536_s17, %s1536_s17 }
  0x4e   : > { %p1539_p7 = pnand %p1537_p5, %p1858_p12  ;;  %p1546_p1 = por %p1545_p13, %p1544_p11 }
  0x50   : > { %p1540_p9 = pneg %p1539_p7 }
  0x52   : > { %p1547_p4 = pnand %p1546_p1, %p1540_p9 }
  0x54   : > { %1550 = shalt.err (!%p1547_p4)
}
  0x55   : > { %1402 = dma.hbm_to_vmem [thread:$0]  (!%p1842_p10), %s2163_s3, 6144, %s1846_s20, [#allocation8], %s1720_s23, %s1720_s23, %s1721_s9  }
  0x56   : > { %s1551_s10 = scalar_lea.hbm %s2137_s5, 2048 }
  0x57   : > { %p1552_p6 = scmp.ne.s32.totalorder %s2137_s5, %s1551_s10  ;;  %p1558_p5 = scmp.lt.u32.totalorder %s1551_s10, %s2137_s5 }
  0x59   : > { %p1554_p0 = pnand %p1552_p6, %p1858_p12 }
  0x5b   : > { %p1555_p3 = pneg %p1554_p0 }
  0x5d   : > { %p1560_p7 = pnand %p1558_p5, %p1555_p3 }
  0x5f   : > { %1563 = shalt.err (!%p1560_p7)
}
  0x60   : > { %s1564_s17 = scalar_lea.vmem %s269_s22, 2048  ;;  %p1572_p1 = scmp.lt.s32.totalorder %s269_s22, %s269_s22 }
  0x61   : > { %p1565_p9 = scmp.ne.s32.totalorder %s269_s22, %s1564_s17  ;;  %p1573_p4 = scmp.lt.s32.totalorder %s1564_s17, %s1564_s17 }
  0x63   : > { %p1567_p11 = pnand %p1565_p9, %p1858_p12  ;;  %p1574_p8 = por %p1573_p4, %p1572_p1 }
  0x65   : > { %p1568_p13 = pneg %p1567_p11 }
  0x67   : > { %p1575_p2 = pnand %p1574_p8, %p1568_p13 }
  0x69   : > { %1578 = shalt.err (!%p1575_p2)
}
  0x6a   : > { %1405 = dma.hbm_to_vmem [thread:$0]  (!%p1842_p10), %s2137_s5, 2048, %s269_s22, [#allocation11], %s1720_s23, %s1720_s23, %s1721_s9  }
  0x6b   : > { %s34_s24 = sadd.s32 1, %s1707_s29  ;;  %s37_s18 = sadd.s32 1, %s1711_s30 }
  0x6c   : > { %p35_p2 = scmp.ge.s32.totalorder %s34_s24, 2  ;;  %s46_s6 = sadd.s32 1, %s1695_s26 }
  0x6d   : > { %p53_p8 = scmp.ne.s32.totalorder %s1695_s26, %s1691_s25  ;;  %p54_p12 = scmp.eq.s32.totalorder %s1715_s8, 0 }
  0x6e   : > { %s2187_s24 = smov (%p35_p2, %s34_s24), 0  ;;  %s2189_s18 = smov (!%p35_p2, %s37_s18), %s1711_s30 }
  0x6f   : > { %s42_s7 = ssub.s32 %s1707_s29, %s2187_s24  ;;  %p39_p6 = scmp.ge.s32.totalorder %s2189_s18, 2 }
  0x70   : > { %p2164_p0 = scmp.ne.s32.totalorder %s2155_s12, 0  ;;  %p1947_p10 = por %p54_p12, %p53_p8 }
  0x71   : > { %p1417_p5 = scmp.lt.s32.totalorder %s1715_s8, 4  ;;  %s2191_s18 = smov (%p39_p6, %s2189_s18), 0 }
  0x72   : > { %p1943_p3 = por %p2164_p0, %p53_p8  ;;  %s285_s23 = sand.u32 1, %s1695_s26  }
  0x73   : > { %s1001_s9 = sshll.u32 %s1711_s30, 1  ;;  %s41_s10 = ssub.s32 %s1711_s30, %s2191_s18 }
  0x74   : > { %s43_s16 = sor.u32 %s42_s7, %s41_s10  ;;  %s1000_s19 = sshll.u32 %s285_s23, 3 }
  0x75   : > { %p44_p7 = scmp.eq.s32.totalorder %s43_s16, 0  ;;  %s294_s12 = sadd.s32 %s1707_s29, %s1001_s9 }
  0x76   : > { %s289_s21 = scalar_lea.vmem [#allocation4], %s1000_s19  ;;  %s1002_s20 = sshll.u32 %s294_s12, 7 }
  0x77   : > { %s298_s14 = sshll.u32 %s289_s21, 4  ;;  %s1967_s3 = scalar_lea.hbm %s2132_s0, %s1002_s20  ;;  %s1962_s14 = int_to_ptr.vmem [resolvable:$true] %s298_s14 }
  0x78   : > { %s1960_s17 = scalar_select %p44_p7, %s1695_s26, %s46_s6  }
  0x79   : > { %p1973_p9 = pnand %p1417_p5, %p1947_p10  ;;  %s286_s6 = scalar_lea.sflag [#allocation5], %s285_s23 }
  0x7a   : > { %s1579_s9 = scalar_lea.hbm %s1967_s3, 128  ;;  %s1584_s10 = scalar_lea.hbm %s2132_s0, 512 }
  0x7b   : > { %p1580_p11 = scmp.ne.s32.totalorder %s1967_s3, %s1579_s9  ;;  %p1581_p13 = pneg %p1973_p9 }
  0x7c   : > { %p1585_p2 = scmp.lt.u32.totalorder %s1967_s3, %s2132_s0  ;;  %p1586_p8 = scmp.lt.u32.totalorder %s1584_s10, %s1579_s9 }
  0x7d   : > { %p1582_p1 = pnand %p1581_p13, %p1580_p11  ;;  %p1588_p6 = scmp.lt.u32.totalorder %s1579_s9, %s1967_s3 }
  0x7e   : > { %p1587_p12 = por %p1586_p8, %p1585_p2 }
  0x7f   : > { %p1583_p4 = pneg %p1582_p1 }
  0x80   : > { %p1589_p0 = por %p1588_p6, %p1587_p12 }
  0x82   : > { %p1590_p10 = pnand %p1589_p0, %p1583_p4 }
  0x84   : > { %1593 = shalt.err (!%p1590_p10)
}
  0x85   : > { %s1594_s23 = scalar_lea.vmem %s1962_s14, 128  ;;  %s1722_s12 = smov [#allocation4]  }
  0x86   : > { %p1595_p5 = scmp.ne.s32.totalorder %s1962_s14, %s1594_s23  ;;  %s1599_s21 = sshll.u32 %s1722_s12, 4  ;;  %s1600_s21 = int_to_ptr.vmem [resolvable:$false] %s1599_s21 }
  0x87   : > { %s1601_s20 = scalar_lea.vmem %s1600_s21, 256  ;;  %p1602_p1 = scmp.lt.s32.totalorder %s1962_s14, %s1600_s21 }
  0x88   : > { %p1597_p7 = pnand %p1595_p5, %p1581_p13  ;;  %p1603_p2 = scmp.lt.s32.totalorder %s1601_s20, %s1594_s23 }
  0x8a   : > { %p1598_p11 = pneg %p1597_p7  ;;  %p1604_p8 = por %p1603_p2, %p1602_p1 }
  0x8c   : > { %p1605_p12 = pnand %p1604_p8, %p1598_p11 }
  0x8e   : > { %1608 = shalt.err (!%p1605_p12)
}
  0x8f   : > { %1409 = dma.hbm_to_vmem [thread:$0]  (!%p1973_p9), %s1967_s3, 128, %s1962_s14, %s286_s6  }
  0x90   : > { %p2168_p4 = scmp.ne.s32.totalorder %s2159_s15, 0 }
  0x91   : > { %s2005_s4 = sand.u32 (!%p2168_p4), 1, %s1691_s25   ;;  %p2169_p13 = scmp.ne.s32.totalorder (!%p2168_p4), %s2156_s13, 0 }
  0x92   : > { %307 = sbr.rel (%p2168_p4) target bundleno = 697 (0x2b9), region = 48  ;;  %s1004_s9 = sshll.u32 (!%p2168_p4), %s2005_s4, 3 }
  0x93   : > { %s310_s1 = scalar_lea.sflag (!%p2168_p4), [#allocation5], %s2005_s4  ;;  %s2009_s22 = scalar_lea.vmem (!%p2168_p4), [#allocation4], %s1004_s9 }
  0x99   : > { %1670 = dma.done.wait (%p2169_p13), %s310_s1, 128  }
  0x9a   : > { %1672 = vsyncadd (%p2169_p13), %s310_s1, 4294967168  ;;  %p2170_p9 = scmp.ne.s32.totalorder %s2154_s11, 0 }
  0x9c   : > { %1674 = dma.done.wait (%p2170_p9), [#allocation8], 12288  }
  0x9d   : > { %1676 = vsyncadd (%p2170_p9), [#allocation8], 4294955008 }
  0x9e   : > { %1678 = dma.done.wait (%p2170_p9), [#allocation11], 2048  }
  0x9f   : > { %1680 = vsyncadd (%p2170_p9), [#allocation11], 4294965248  ;;  %s2023_s3 = scalar_lea.vmem [#allocation12], %s1004_s9  ;;  %p1009_p6 = scmp.ne.s32.totalorder %s1699_s27, 0 }
  0xa0   : > { %v1723_v0 = vmov (!%p1009_p6), 0.0  }
  0xa1   : > { %359 = sbr.rel (%p1009_p6) target bundleno = 168 (0xa8), region = 68  ;;  %360 = vst [vmem:[#allocation2] sm:$0xf] (!%p1009_p6), %v1723_v0  ;;  %361 = vst [vmem:[#allocation3] sm:$0xf] (!%p1009_p6), %v1723_v0 }
  0xa8 PF: > { %v383_v1 = vld [vmem:[#allocation7 + $0x80] sm:$0xff]  ;;  %v384_v2 = vld [vmem:[#allocation7 + $0x88] sm:$0xff]  ;;  %v385_v6 = vld [vmem:[#allocation7 + $0x90] sm:$0xff]  ;;  %v1724_v8 = vmov 0.0|0.0   ;;  %vm1725_vm0 = vmmov 0   ;;  %v1726_v9 = vmov 0.0  }
  0xa9   : > { %v367_v3 = vld [vmem:[#allocation7] sm:$0xff]  ;;  %v1244_v4 = vpack.c.bf16 %v384_v2, %v383_v1  ;;  %v368_v5 = vld [vmem:[#allocation7 + $0x8] sm:$0xff]  ;;  %v386_v7 = vld [vmem:[#allocation7 + $0x98] sm:$0xff]  ;;  %1276 = vmatprep.subr.bf16.mxu1 %v1724_v8  ;;  %1171 = vmatprep.mubr.msk.f32.mxu1 %vm1725_vm0, %v1726_v9  ;;  %s2171_s15 = sld [smem:[#allocation18_spill]]  ;;  %s2172_s6 = sld [smem:[#allocation22_spill]] }
  0xaa   : > { %v1246_v10 = vpack.c.bf16 %v368_v5, %v367_v3  ;;  %v1248_v11 = vpack.c.bf16 %v386_v7, %v385_v6  ;;  %v369_v12 = vld [vmem:[#allocation7 + $0x10] sm:$0xff]  ;;  %v370_v13 = vld [vmem:[#allocation7 + $0x18] sm:$0xff]  ;;  %v399_v14 = vld [vmem:[#allocation7 + $0x100] sm:$0xff]  ;;  %s2173_s23 = sld [smem:[#allocation23_spill]]  ;;  %s879_s20 = sshll.u32 %s2023_s3, 4  ;;  %s2079_s20 = int_to_ptr.vmem [resolvable:$true] %s879_s20 }
  0xab   : > { %1245 = vmatprep.subr.bf16.mxu0 %v1244_v4  ;;  %v400_v15 = vld [vmem:[#allocation7 + $0x108] sm:$0xff]  ;;  %v387_v16 = vld [vmem:[#allocation7 + $0xa0] sm:$0xff]  ;;  %v1250_v18 = vpack.c.bf16 %v370_v13, %v369_v12  ;;  %v401_v20 = vld [vmem:[#allocation7 + $0x110] sm:$0xff]  ;;  %s1609_s13 = scalar_lea.vmem %s2079_s20, 128 }
  0xac   : > { %v388_v17 = vld [vmem:[#allocation7 + $0xa8] sm:$0xff]  ;;  %1247 = vmatpush3.bf16.msra.mxu0 %v1246_v10  ;;  %v1277_v19 = vpack.c.bf16 %v400_v15, %v399_v14  ;;  %v371_v22 = vld [vmem:[#allocation7 + $0x20] sm:$0xff]  ;;  %v402_v24 = vld [vmem:[#allocation7 + $0x118] sm:$0xff]  ;;  %p1610_p0 = scmp.ne.s32.totalorder %s2079_s20, %s1609_s13 }
  0xad   : > { %1249 = vmatprep.subr.bf16.mxu0 %v1248_v11  ;;  %v1252_v21 = vpack.c.bf16 %v388_v17, %v387_v16  ;;  %v372_v23 = vld [vmem:[#allocation7 + $0x28] sm:$0xff]  ;;  %v1280_v25 = vpack.c.bf16 %v402_v24, %v401_v20  ;;  %v389_v26 = vld [vmem:[#allocation7 + $0xb0] sm:$0xff]  ;;  %v390_v27 = vld [vmem:[#allocation7 + $0xb8] sm:$0xff] }
  0xae   : > { %1278 = vmatpush3.bf16.msra.mxu1 %v1277_v19  ;;  %v403_v28 = vld [vmem:[#allocation7 + $0x120] sm:$0xff]  ;;  %v404_v29 = vld [vmem:[#allocation7 + $0x128] sm:$0xff]  ;;  %v1254_v30 = vpack.c.bf16 %v372_v23, %v371_v22  ;;  %v1256_v31 = vpack.c.bf16 %v390_v27, %v389_v26  ;;  %v373_v32 = vld [vmem:[#allocation7 + $0x30] sm:$0xff]  ;;  %p1611_p10 = pnand %p1610_p0, %p1943_p3 }
  0xaf   : > { %1279 = vmatprep.subr.bf16.mxu1 %v1724_v8  ;;  %v374_v33 = vld [vmem:[#allocation7 + $0x38] sm:$0xff]  ;;  %v1283_v34 = vpack.c.bf16 %v404_v29, %v403_v28  ;;  %v391_v35 = vld [vmem:[#allocation7 + $0xc0] sm:$0xff]  ;;  %v392_v36 = vld [vmem:[#allocation7 + $0xc8] sm:$0xff]  ;;  %s1014_s10 = sshll.u32 %s2171_s15, 1  ;;  %s1727_s15 = smov [#allocation12]  }
  0xb0   : > { %1251 = vmatpush3.bf16.msra.mxu0 %v1250_v18  ;;  %v405_v37 = vld [vmem:[#allocation7 + $0x130] sm:$0xff]  ;;  %v406_v38 = vld [vmem:[#allocation7 + $0x138] sm:$0xff]  ;;  %v1258_v39 = vpack.c.bf16 %v374_v33, %v373_v32  ;;  %v1260_v40 = vpack.c.bf16 %v392_v36, %v391_v35  ;;  %v375_v41 = vld [vmem:[#allocation7 + $0x40] sm:$0xff]  ;;  %s875_s12 = sadd.s32 %s1699_s27, %s1014_s10  ;;  %s864_s27 = scalar_lea.sflag [#allocation6], %s2005_s4 }
  0xb1   : > { %1253 = vmatprep.subr.bf16.mxu0 %v1252_v21  ;;  %v376_v42 = vld [vmem:[#allocation7 + $0x48] sm:$0xff]  ;;  %v1286_v43 = vpack.c.bf16 %v406_v38, %v405_v37  ;;  %v393_v44 = vld [vmem:[#allocation7 + $0xd0] sm:$0xff]  ;;  %v394_v45 = vld [vmem:[#allocation7 + $0xd8] sm:$0xff]  ;;  %s1015_s21 = sshll.u32 %s875_s12, 7  ;;  %p1612_p5 = pneg %p1611_p10 }
  0xb2   : > { %1281 = vmatpush3.bf16.msra.mxu1 %v1280_v25  ;;  %v407_v46 = vld [vmem:[#allocation7 + $0x140] sm:$0xff]  ;;  %v408_v47 = vld [vmem:[#allocation7 + $0x148] sm:$0xff]  ;;  %v2033_v48 = vld [vmem:[%s2009_s22] sm:$0xff]  ;;  %v1262_v49 = vpack.c.bf16 %v376_v42, %v375_v41  ;;  %v1264_v50 = vpack.c.bf16 %v394_v45, %v393_v44  ;;  %s2174_s22 = sld [smem:[#allocation24_spill]]  ;;  %s1613_s14 = sshll.u32 %s1727_s15, 4  ;;  %s1614_s14 = int_to_ptr.vmem [resolvable:$false] %s1613_s14 }
  0xb3   : > { %1282 = vmatprep.subr.bf16.mxu1 %v1724_v8  ;;  %363 = vst [vmem:[#allocation2 + $0x4] sm:$0xff] %v2033_v48  ;;  %v377_v51 = vld [vmem:[#allocation7 + $0x50] sm:$0xff]  ;;  %v378_v52 = vld [vmem:[#allocation7 + $0x58] sm:$0xff]  ;;  %v1289_v53 = vpack.c.bf16 %v408_v47, %v407_v46  ;;  %v395_v54 = vld [vmem:[#allocation7 + $0xe0] sm:$0xff]  ;;  %s1615_s7 = scalar_lea.vmem %s1614_s14, 256  ;;  %p1616_p7 = scmp.lt.s32.totalorder %s2079_s20, %s1614_s14 }
  0xb4   : > { %1255 = vmatpush3.bf16.msra.mxu0 %v1254_v30  ;;  %v396_v55 = vld [vmem:[#allocation7 + $0xe8] sm:$0xff]  ;;  %v409_v56 = vld [vmem:[#allocation7 + $0x150] sm:$0xff]  ;;  %v410_v57 = vld [vmem:[#allocation7 + $0x158] sm:$0xff]  ;;  %v1266_v58 = vpack.c.bf16 %v378_v52, %v377_v51  ;;  %p1617_p11 = scmp.lt.s32.totalorder %s1615_s7, %s1609_s13 }
  0xb5   : > { %1257 = vmatprep.subr.bf16.mxu0 %v1256_v31  ;;  %v1268_v59 = vpack.c.bf16 %v396_v55, %v395_v54  ;;  %v379_v60 = vld [vmem:[#allocation7 + $0x60] sm:$0xff]  ;;  %v380_v61 = vld [vmem:[#allocation7 + $0x68] sm:$0xff]  ;;  %v397_v62 = vld [vmem:[#allocation7 + $0xf0] sm:$0xff]  ;;  %v1292_v63 = vpack.c.bf16 %v410_v57, %v409_v56 }
  0xb6   : > { %1284 = vmatpush3.bf16.msra.mxu1 %v1283_v34  ;;  %v398_v0 = vld [vmem:[#allocation7 + $0xf8] sm:$0xff]  ;;  %v411_v1 = vld [vmem:[#allocation7 + $0x160] sm:$0xff]  ;;  %v412_v2 = vld [vmem:[#allocation7 + $0x168] sm:$0xff]  ;;  %v1270_v6 = vpack.c.bf16 %v380_v61, %v379_v60  ;;  %p1618_p1 = por %p1617_p11, %p1616_p7 }
  0xb7   : > { %1285 = vmatprep.subr.bf16.mxu1 %v1724_v8  ;;  %v1272_v7 = vpack.c.bf16 %v398_v0, %v397_v62  ;;  %v381_v10 = vld [vmem:[#allocation7 + $0x70] sm:$0xff]  ;;  %v382_v11 = vld [vmem:[#allocation7 + $0x78] sm:$0xff]  ;;  %v1295_v12 = vpack.c.bf16 %v412_v2, %v411_v1  ;;  %v583_v13 = vld [vmem:[#allocation9 + $0x80] sm:$0xff] }
  0xb8   : > { %1259 = vmatpush3.bf16.msra.mxu0 %v1258_v39  ;;  %v584_v14 = vld [vmem:[#allocation9 + $0x88] sm:$0xff]  ;;  %v413_v15 = vld [vmem:[#allocation7 + $0x170] sm:$0xff]  ;;  %v414_v16 = vld [vmem:[#allocation7 + $0x178] sm:$0xff]  ;;  %v1274_v17 = vpack.c.bf16 %v382_v11, %v381_v10  ;;  %s2077_s11 = scalar_lea.hbm %s2174_s22, %s1015_s21  ;;  %p1619_p2 = pnand %p1618_p1, %p1612_p5 }
  0xb9   : > { %1261 = vmatprep.subr.bf16.mxu0 %v1260_v40  ;;  %v1300_v18 = vpack.c.bf16 %v584_v14, %v583_v13  ;;  %v567_v19 = vld [vmem:[#allocation9] sm:$0xff]  ;;  %v568_v20 = vld [vmem:[#allocation9 + $0x8] sm:$0xff]  ;;  %v1298_v21 = vpack.c.bf16 %v414_v16, %v413_v15  ;;  %v585_v22 = vld [vmem:[#allocation9 + $0x90] sm:$0xff] }
  0xba   : > { %1287 = vmatpush3.bf16.msra.mxu1 %v1286_v43  ;;  %v365_v3 = vld [vmem:[#allocation2 + $0x2] sm:$0xff]  ;;  %v599_v24 = vld [vmem:[#allocation9 + $0x100] sm:$0xff]  ;;  %v600_v25 = vld [vmem:[#allocation9 + $0x108] sm:$0xff]  ;;  %v1302_v26 = vpack.c.bf16 %v568_v20, %v567_v19 }
  0xbb   : > { %1288 = vmatprep.subr.bf16.mxu1 %v1724_v8  ;;  %v364_v4 = vld [vmem:[#allocation2] sm:$0xff]  ;;  %v859_v5 = vld [vmem:[#allocation2 + $0x8] sm:$0xf]  ;;  %486 = vmatprep.mubr.f32.mxu0 %v365_v3  ;;  %v1333_v30 = vpack.c.bf16 %v600_v25, %v599_v24  ;;  %v587_v31 = vld [vmem:[#allocation9 + $0xa0] sm:$0xff] }
  0xbc   : > { %1263 = vmatpush3.bf16.msra.mxu0 %v1262_v49  ;;  %860 = vst [vmem:[#allocation2] sm:$0xf] %v859_v5  ;;  %v586_v23 = vld [vmem:[#allocation9 + $0x98] sm:$0xff]  ;;  %v569_v28 = vld [vmem:[#allocation9 + $0x10] sm:$0xff]  ;;  %v588_v32 = vld [vmem:[#allocation9 + $0xa8] sm:$0xff] }
  0xbd   : > { %1265 = vmatprep.subr.bf16.mxu0 %v1264_v50  ;;  %v1304_v27 = vpack.c.bf16 %v586_v23, %v585_v22  ;;  %v570_v29 = vld [vmem:[#allocation9 + $0x18] sm:$0xff]  ;;  %v601_v33 = vld [vmem:[#allocation9 + $0x110] sm:$0xff]  ;;  %v1308_v36 = vpack.c.bf16 %v588_v32, %v587_v31  ;;  %v571_v37 = vld [vmem:[#allocation9 + $0x20] sm:$0xff] }
  0xbe   : > { %1290 = vmatpush3.bf16.msra.mxu1 %v1289_v53  ;;  %v602_v34 = vld [vmem:[#allocation9 + $0x118] sm:$0xff]  ;;  %v1306_v35 = vpack.c.bf16 %v570_v29, %v569_v28  ;;  %v572_v38 = vld [vmem:[#allocation9 + $0x28] sm:$0xff]  ;;  %v589_v40 = vld [vmem:[#allocation9 + $0xb0] sm:$0xff] }
  0xbf   : > { %1291 = vmatprep.subr.bf16.mxu1 %v1724_v8  ;;  %v1336_v39 = vpack.c.bf16 %v602_v34, %v601_v33  ;;  %v590_v41 = vld [vmem:[#allocation9 + $0xb8] sm:$0xff]  ;;  %v603_v42 = vld [vmem:[#allocation9 + $0x120] sm:$0xff]  ;;  %v604_v43 = vld [vmem:[#allocation9 + $0x128] sm:$0xff]  ;;  %v1310_v44 = vpack.c.bf16 %v572_v38, %v571_v37 }
  0xc0   : > { %1267 = vmatpush3.bf16.msra.mxu0 %v1266_v58  ;;  %v1312_v45 = vpack.c.bf16 %v590_v41, %v589_v40  ;;  %v573_v46 = vld [vmem:[#allocation9 + $0x30] sm:$0xff]  ;;  %v574_v47 = vld [vmem:[#allocation9 + $0x38] sm:$0xff]  ;;  %v1339_v49 = vpack.c.bf16 %v604_v43, %v603_v42  ;;  %v607_v54 = vld [vmem:[#allocation9 + $0x140] sm:$0xff] }
  0xc1   : > { %1269 = vmatprep.subr.bf16.mxu0 %v1268_v59  ;;  %v605_v50 = vld [vmem:[#allocation9 + $0x130] sm:$0xff]  ;;  %v606_v51 = vld [vmem:[#allocation9 + $0x138] sm:$0xff]  ;;  %v1314_v52 = vpack.c.bf16 %v574_v47, %v573_v46  ;;  %v608_v55 = vld [vmem:[#allocation9 + $0x148] sm:$0xff] }
  0xc2   : > { %1293 = vmatpush3.bf16.msra.mxu1 %v1292_v63  ;;  %v1342_v53 = vpack.c.bf16 %v606_v51, %v605_v50  ;;  %v1345_v56 = vpack.c.bf16 %v608_v55, %v607_v54  ;;  %v609_v57 = vld [vmem:[#allocation9 + $0x150] sm:$0xff]  ;;  %v610_v58 = vld [vmem:[#allocation9 + $0x158] sm:$0xff]  ;;  %v591_v60 = vld [vmem:[#allocation9 + $0xc0] sm:$0xff] }
  0xc3   : > { %1294 = vmatprep.subr.bf16.mxu1 %v1724_v8  ;;  %v1348_v59 = vpack.c.bf16 %v610_v58, %v609_v57  ;;  %v592_v61 = vld [vmem:[#allocation9 + $0xc8] sm:$0xff]  ;;  %v575_v63 = vld [vmem:[#allocation9 + $0x40] sm:$0xff]  ;;  %v593_v5 = vld [vmem:[#allocation9 + $0xd0] sm:$0xff] }
  0xc4   : > { %1271 = vmatpush3.bf16.msra.mxu0 %v1270_v6  ;;  %v1316_v62 = vpack.c.bf16 %v592_v61, %v591_v60  ;;  %v576_v0 = vld [vmem:[#allocation9 + $0x48] sm:$0xff]  ;;  %v611_v1 = vld [vmem:[#allocation9 + $0x160] sm:$0xff]  ;;  %v594_v6 = vld [vmem:[#allocation9 + $0xd8] sm:$0xff] }
  0xc5   : > { %1273 = vmatprep.subr.bf16.mxu0 %v1272_v7  ;;  %v1318_v2 = vpack.c.bf16 %v576_v0, %v575_v63  ;;  %v612_v3 = vld [vmem:[#allocation9 + $0x168] sm:$0xff]  ;;  %v1320_v7 = vpack.c.bf16 %v594_v6, %v593_v5  ;;  %v577_v10 = vld [vmem:[#allocation9 + $0x50] sm:$0xff]  ;;  %v578_v11 = vld [vmem:[#allocation9 + $0x58] sm:$0xff] }
  0xc6   : > { %1296 = vmatpush3.bf16.msra.mxu1 %v1295_v12  ;;  %v613_v12 = vld [vmem:[#allocation9 + $0x170] sm:$0xff]  ;;  %v1322_v13 = vpack.c.bf16 %v578_v11, %v577_v10  ;;  %v614_v14 = vld [vmem:[#allocation9 + $0x178] sm:$0xff]  ;;  %v595_v16 = vld [vmem:[#allocation9 + $0xe0] sm:$0xff] }
  0xc7   : > { %1297 = vmatprep.subr.bf16.mxu1 %v1724_v8  ;;  %v1354_v15 = vpack.c.bf16 %v614_v14, %v613_v12  ;;  %v579_v19 = vld [vmem:[#allocation9 + $0x60] sm:$0xff]  ;;  %v580_v20 = vld [vmem:[#allocation9 + $0x68] sm:$0xff]  ;;  %v597_v22 = vld [vmem:[#allocation9 + $0xf0] sm:$0xff] }
  0xc8   : > { %1275 = vmatpush3.bf16.msra.mxu0 %v1274_v17  ;;  %v596_v17 = vld [vmem:[#allocation9 + $0xe8] sm:$0xff]  ;;  %v598_v23 = vld [vmem:[#allocation9 + $0xf8] sm:$0xff]  ;;  %v581_v24 = vld [vmem:[#allocation9 + $0x70] sm:$0xff] }
  0xc9   : > { %1301 = vmatprep.subr.bf16.mxu0 %v1300_v18  ;;  %v1324_v18 = vpack.c.bf16 %v596_v17, %v595_v16  ;;  %v1328_v25 = vpack.c.bf16 %v598_v23, %v597_v22  ;;  %v763_v37 = vld [vmem:[#allocation10] sm:$0xff]  ;;  %v764_v38 = vld [vmem:[#allocation10 + $0x8] sm:$0xff]  ;;  %v765_v40 = vld [vmem:[#allocation10 + $0x10] sm:$0xff] }
  0xca   : > { %1299 = vmatpush3.bf16.msra.mxu1 %v1298_v21  ;;  %v1326_v21 = vpack.c.bf16 %v580_v20, %v579_v19  ;;  %v766_v41 = vld [vmem:[#allocation10 + $0x18] sm:$0xff]  ;;  %v767_v46 = vld [vmem:[#allocation10 + $0x20] sm:$0xff]  ;;  %v768_v47 = vld [vmem:[#allocation10 + $0x28] sm:$0xff] }
  0xcb   : > { %487 = vmatmul.mubr.f32.vlgmr.msra.gmra.mrb[0].mxu0 %v364_v4  ;;  %1332 = vmatprep.subr.bf16.mxu1 %v1724_v8  ;;  %v1351_v4 = vpack.c.bf16 %v612_v3, %v611_v1  ;;  %v769_v50 = vld [vmem:[#allocation10 + $0x30] sm:$0xff]  ;;  %v770_v51 = vld [vmem:[#allocation10 + $0x38] sm:$0xff]  ;;  %v772_v54 = vld [vmem:[#allocation10 + $0x48] sm:$0xff] }
  0xcc   : > { %1303 = vmatpush3.bf16.msra.mxu0 %v1302_v26  ;;  %v582_v26 = vld [vmem:[#allocation9 + $0x78] sm:$0xff]  ;;  %v775_v58 = vld [vmem:[#allocation10 + $0x60] sm:$0xff]  ;;  %v777_v61 = vld [vmem:[#allocation10 + $0x70] sm:$0xff] }
  0xcd   : > { %1172 = vmatmul.mubr.f32.vlgmr.msra.gmra.mrb[0].mxu1 %v2033_v48  ;;  %1305 = vmatprep.subr.bf16.mxu0 %v1304_v27  ;;  %v1330_v27 = vpack.c.bf16 %v582_v26, %v581_v24  ;;  %v1011_v3 = vld [vmem:[%s2172_s6] ss:$0 sm:$0xff] }
  0xce   : > { %1334 = vmatpush3.bf16.msra.mxu1 %v1333_v30  ;;  %1206 = vmatprep.mubr.msk.f32.mxu1 %vm1725_vm0, %v1726_v9  ;;  %v1010_v30 = vld [vmem:[%s2134_s2] ss:$0 sm:$0xff] }
  0xcf   : > { %1335 = vmatprep.subr.bf16.mxu1 %v1724_v8 }
  0xd0   : > { %1307 = vmatpush3.bf16.msra.mxu0 %v1306_v35 }
  0xd1   : > { %1309 = vmatprep.subr.bf16.mxu0 %v1308_v36 }
  0xd2   : > { %1337 = vmatpush3.bf16.msra.mxu1 %v1336_v39  ;;  %v1357_v39 = vpack.c.bf16 %v764_v38, %v763_v37 }
  0xd3   : > { %1338 = vmatprep.subr.bf16.mxu1 %v1724_v8 }
  0xd4   : > { %1311 = vmatpush3.bf16.msra.mxu0 %v1310_v44 }
  0xd5   : > { %1313 = vmatprep.subr.bf16.mxu0 %v1312_v45  ;;  %v1360_v45 = vpack.c.bf16 %v766_v41, %v765_v40 }
  0xd6   : > { %1340 = vmatpush3.bf16.msra.mxu1 %v1339_v49  ;;  %v1363_v49 = vpack.c.bf16 %v768_v47, %v767_v46 }
  0xd7   : > { %1341 = vmatprep.subr.bf16.mxu1 %v1724_v8 }
  0xd8   : > { %1315 = vmatpush3.bf16.msra.mxu0 %v1314_v52  ;;  %v1366_v52 = vpack.c.bf16 %v770_v51, %v769_v50 }
  0xd9   : > { %1317 = vmatprep.subr.bf16.mxu0 %v1316_v62  ;;  %v778_v62 = vld [vmem:[#allocation10 + $0x78] sm:$0xff] }
  0xda   : > { %1343 = vmatpush3.bf16.msra.mxu1 %v1342_v53  ;;  %v771_v53 = vld [vmem:[#allocation10 + $0x40] sm:$0xff]  ;;  %v1378_v63 = vpack.c.bf16 %v778_v62, %v777_v61 }
  0xdb   : > { %1344 = vmatprep.subr.bf16.mxu1 %v1724_v8  ;;  %v1369_v55 = vpack.c.bf16 %v772_v54, %v771_v53 }
  0xdc   : > { %1319 = vmatpush3.bf16.msra.mxu0 %v1318_v2 }
  0xdd   : > { %1321 = vmatprep.subr.bf16.mxu0 %v1320_v7 }
  0xde   : > { %1346 = vmatpush3.bf16.msra.mxu1 %v1345_v56  ;;  %v774_v56 = vld [vmem:[#allocation10 + $0x58] sm:$0xff] }
  0xdf   : > { %1347 = vmatprep.subr.bf16.mxu1 %v1724_v8 }
  0xe0   : > { %1323 = vmatpush3.bf16.msra.mxu0 %v1322_v13 }
  0xe1   : > { %1325 = vmatprep.subr.bf16.mxu0 %v1324_v18 }
  0xe2   : > { %1349 = vmatpush3.bf16.msra.mxu1 %v1348_v59  ;;  %v776_v59 = vld [vmem:[#allocation10 + $0x68] sm:$0xff] }
  0xe3   : > { %1350 = vmatprep.subr.bf16.mxu1 %v1724_v8  ;;  %v1375_v60 = vpack.c.bf16 %v776_v59, %v775_v58 }
  0xe4   : > { %1327 = vmatpush3.bf16.msra.mxu0 %v1326_v21 }
  0xe5   : > { %1329 = vmatprep.subr.bf16.mxu0 %v1328_v25 }
  0xe6   : > { %1352 = vmatpush3.bf16.msra.mxu1 %v1351_v4 }
  0xe7   : > { %1353 = vmatprep.subr.bf16.mxu1 %v1724_v8 }
  0xe8   : > { %1331 = vmatpush3.bf16.msra.mxu0 %v1330_v27 }
  0xe9   : > { %1356 = vmatprep.subr.bf16.mxu0 %v1724_v8 }
  0xea   : > { %1355 = vmatpush3.bf16.msra.mxu1 %v1354_v15 }
 0x19e   : > { %v1050_v28 = vpop.f32.mrb[0].mxu0 }
 0x19f   : > { %v1051_v29 = vpop.f32.mrb[1].mxu0 }
 0x1a0   : > { %v1052_v31 = vadd.f32 %v1051_v29, %v1050_v28  ;;  %v558_v32 = vpop.f32.mrb[0].mxu1 }
 0x1a1   : > { %v1173_v33 = vpop.f32.mrb[1].mxu1 }
 0x1a2   : > { %v489_v34 = vadd.f32 %v1052_v31, %v1010_v30 }
 0x1a4   : > { %v559_v35 = vadd.f32 %v558_v32, %v489_v34 }
 0x1a6   : > { %v562_v36 = vmax.f32 %v559_v35, 0.0 }
 0x1a8   : > { %563 = vst [vmem:[#allocation3 + $0x4] sm:$0xff] %v562_v36  ;;  %1207 = vmatmul.mubr.f32.vlgmr.msra.gmra.mrb[2].mxu1 %v562_v36 }
 0x1af   : > { %v565_v42 = vld [vmem:[#allocation3 + $0x2] sm:$0xff] }
 0x1b0   : > { %v564_v43 = vld [vmem:[#allocation3] sm:$0xff]  ;;  %v861_v44 = vld [vmem:[#allocation3 + $0x8] sm:$0xf]  ;;  %686 = vmatprep.mubr.f32.mxu0 %v565_v42 }
 0x1b1   : > { %862 = vst [vmem:[#allocation3] sm:$0xf] %v861_v44  ;;  %687 = vmatmul.mubr.f32.vlgmr.msra.gmra.mrb[2].mxu0 %v564_v43 }
 0x1b2   : > { %1358 = vmatpush3.bf16.msra.mxu0 %v1357_v39  ;;  %1241 = vmatprep.mubr.msk.f32.mxu0 %vm1725_vm0, %v1726_v9  ;;  %v773_v9 = vld [vmem:[#allocation10 + $0x50] sm:$0xff] }
 0x1b3   : > { %1359 = vmatprep.subr.bf16.mxu0 %v1724_v8  ;;  %v1372_v57 = vpack.c.bf16 %v774_v56, %v773_v9 }
 0x1b6   : > { %1361 = vmatpush3.bf16.msra.mxu0 %v1360_v45 }
 0x1b7   : > { %1362 = vmatprep.subr.bf16.mxu0 %v1724_v8 }
 0x1ba   : > { %1364 = vmatpush3.bf16.msra.mxu0 %v1363_v49 }
 0x1bb   : > { %1365 = vmatprep.subr.bf16.mxu0 %v1724_v8 }
 0x1be   : > { %1367 = vmatpush3.bf16.msra.mxu0 %v1366_v52 }
 0x1bf   : > { %1368 = vmatprep.subr.bf16.mxu0 %v1724_v8 }
 0x1c2   : > { %1370 = vmatpush3.bf16.msra.mxu0 %v1369_v55 }
 0x1c3   : > { %1371 = vmatprep.subr.bf16.mxu0 %v1724_v8 }
 0x1c6   : > { %1373 = vmatpush3.bf16.msra.mxu0 %v1372_v57 }
 0x1c7   : > { %1374 = vmatprep.subr.bf16.mxu0 %v1724_v8 }
 0x1ca   : > { %1376 = vmatpush3.bf16.msra.mxu0 %v1375_v60 }
 0x1cb   : > { %1377 = vmatprep.subr.bf16.mxu0 %v1724_v8  ;;  %v1012_v8 = vld [vmem:[%s2173_s23] ss:$0 sm:$0xff] }
 0x1ce   : > { %1379 = vmatpush3.bf16.msra.mxu0 %v1378_v63 }
 0x1d1   : > { %1242 = vmatmul.mubr.f32.vlgmr.msra.gmra.mrb[4].mxu0 %v2033_v48 }
 0x27b   : > { %v758_v0 = vpop.f32.mrb[2].mxu1 }
 0x27c   : > { %v1208_v1 = vpop.f32.mrb[3].mxu1 }
 0x284   : > { %v1102_v2 = vpop.f32.mrb[2].mxu0 }
 0x285   : > { %v1103_v4 = vpop.f32.mrb[3].mxu0 }
 0x286   : > { %v1104_v5 = vadd.f32 %v1103_v4, %v1102_v2 }
 0x288   : > { %v689_v6 = vadd.f32 %v1104_v5, %v1011_v3 }
 0x28a   : > { %v759_v7 = vadd.f32 %v758_v0, %v689_v6 }
 0x28c   : > { %v762_v10 = vmax.f32 %v759_v7, 0.0 }
 0x2a4   : > { %v852_v48 = vpop.f32.mrb[4].mxu0 }
 0x2a5   : > { %v853_v11 = vadd.f32 %v1012_v8, %v852_v48  ;;  %v1243_v12 = vpop.f32.mrb[5].mxu0 }
 0x2a7   : > { %v856_v13 = vadd.f32 %v853_v11, %v762_v10 }
 0x2a9   : > { %v857_v14 = vmax.f32 %v856_v13, 0.0 }
 0x2ab   : > { %858 = vst [vmem:[%s2023_s3] sm:$0xff] %v857_v14 }
 0x2ac   : > { %1622 = shalt.err (!%p1619_p2)
}
 0x2ad   : > { %s1623_s4 = scalar_lea.hbm %s2077_s11, 128  ;;  %s1627_s10 = scalar_lea.hbm %s2174_s22, 512 }
 0x2ae   : > { %p1624_p8 = scmp.ne.s32.totalorder %s2077_s11, %s1623_s4  ;;  %p1628_p13 = scmp.lt.u32.totalorder %s2077_s11, %s2174_s22 }
 0x2af   : > { %p1629_p9 = scmp.lt.u32.totalorder %s1627_s10, %s1623_s4  ;;  %p1631_p0 = scmp.lt.u32.totalorder %s1623_s4, %s2077_s11 }
 0x2b0   : > { %p1625_p12 = pnand %p1624_p8, %p1943_p3 }
 0x2b1   : > { %p1630_p6 = por %p1629_p9, %p1628_p13 }
 0x2b2   : > { %p1626_p4 = pneg %p1625_p12 }
 0x2b3   : > { %p1632_p10 = por %p1631_p0, %p1630_p6 }
 0x2b5   : > { %p1633_p5 = pnand %p1632_p10, %p1626_p4 }
 0x2b7   : > { %1636 = shalt.err (!%p1633_p5)
}
 0x2b8   : > { %1394 = dma.vmem_to_hbm [thread:$0]  (%p1943_p3), %s2079_s20, 128, %s2077_s11, %s864_s27  }
 0x2b9 PF: > { %s2175_s23 = sld [smem:[#allocation17_spill]]  ;;  %s2176_s12 = sld [smem:[#allocation19_spill]] }
 0x2ba   : > { %p1421_p7 = scmp.ge.s32.totalorder %s1715_s8, 2 }
 0x2bf   : > { %s891_s21 = sand.u32 1, %s2175_s23   ;;  %p2177_p11 = scmp.ne.s32.totalorder %s2176_s12, 0 }
 0x2c0   : > { %s892_s9 = scalar_lea.sflag [#allocation6], %s891_s21 }
 0x2c1   : > { %p1411_p1 = pnand %p1421_p7, %p2177_p11 }
 0x2c3   : > { %1682 = dma.done.wait (!%p1411_p1), %s892_s9, 128  }
 0x2c4   : > { %1684 = vsyncadd (!%p1411_p1), %s892_s9, 4294967168  ;;  %s25_s8 = sadd.s32 1, %s1715_s8   ;;  %s2178_s20 = smov %s2187_s24 }
 0x2c5   : > { %p22_p2 = scmp.ge.s32.totalorder %s25_s8, 6   ;;  %s2179_s24 = smov %s1691_s25 }
 0x2c6   : > { %s2180_s25 = smov %s1695_s26  ;;  %s2181_s26 = smov %s1960_s17 }
 0x2c7   : > { %s2182_s27 = smov %s1707_s29  ;;  %s2183_s28 = smov %s1711_s30 }
 0x2c8   : > { %s2184_s29 = smov %s2178_s20  ;;  %s2185_s30 = smov %s2191_s18 }
 0x2c9   :  { %24 = sbr.rel (!%p22_p2) target bundleno = 15 (0xf), region = 109 }
 0x2d0   :  { %897 = vsyncpa [#allocation5], 1 }
 0x2d1   :  { %899 = vsyncpa [#allocation5 + $0x1], 1 }
 0x2d2   :  { %900 = vsyncpa [#allocation8], 1 }
 0x2d3   :  { %901 = vsyncpa [#allocation11], 1 }
 0x2d4   :  { %902 = vsyncpa [#allocation6], 1 }
 0x2d5   :  { %904 = vsyncpa [#allocation6 + $0x1], 1 }

// kernel: tpu_custom_call.1
= control target key start
LH: loop header
LB: loop body
LE: loop exit
PB: predicated region body
PF: predicated region fallthrough
CT: control target
= control target key end

     0   :  { %s2132_s0 = inlined_call_operand.hbm [shape: f32[2,16,128], index: 0, kind: input, shape index: {}]   ;;  %s2133_s1 = inlined_call_operand.hbm [shape: f32[384,128], index: 1, kind: input, shape index: {}]   ;;  %s2134_s2 = inlined_call_operand.vmem [shape: f32[1,128], index: 2, kind: input, shape index: {}]   ;;  %s2135_s3 = inlined_call_operand.hbm [shape: f32[384,128], index: 3, kind: input, shape index: {}]   ;;  %s2136_s4 = inlined_call_operand.vmem [shape: f32[1,128], index: 4, kind: input, shape index: {}]   ;;  %s2137_s5 = inlined_call_operand.hbm [shape: f32[128,128], index: 5, kind: input, shape index: {}]   ;;  %s2138_s6 = inlined_call_operand.vmem [shape: f32[1,128], index: 6, kind: input, shape index: {}]   ;;  %s2139_s7 = inlined_call_operand.hbm [shape: f32[2,16,128], index: 7, kind: output, shape index: {}]  }
   0x1   :  { %2147 = sst [smem:[#allocation20_spill]] %s2133_s1 }
   0x2   :  { %2148 = sst [smem:[#allocation21_spill]] %s2135_s3 }
   0x3   :  { %2149 = sst [smem:[#allocation22_spill]] %s2136_s4 }
   0x4   :  { %2150 = sst [smem:[#allocation23_spill]] %s2138_s6 }
   0x5   :  { %2151 = sst [smem:[#allocation24_spill]] %s2139_s7 }
   0x6   :  { %12 = vsyncpa [#allocation5], 0 }
   0x7   :  { %14 = vsyncpa [#allocation5 + $0x1], 0 }
   0x8   :  { %15 = vsyncpa [#allocation8], 0 }
   0x9   :  { %16 = vsyncpa [#allocation11], 0 }
   0xa   :  { %17 = vsyncpa [#allocation6], 0 }
   0xb   :  { %19 = vsyncpa [#allocation6 + $0x1], 0  ;;  %s1768_s24 = smov 0   ;;  %s1770_s25 = smov 0  }
   0xc   :  { %s1772_s26 = smov 0   ;;  %s1774_s27 = smov 0  }
   0xd   :  { %s1776_s28 = smov 0   ;;  %s1778_s29 = smov 0  }
   0xe   :  { %s1780_s30 = smov 0   ;;  %s1782_s8 = smov 0  }
   0xf LB: > { %2152 = sst [smem:[#allocation17_spill]] %s1687_s24  ;;  %s993_s9 = sadd.s32 4294967295, %s1715_s8   ;;  %s1715_s8 = sphi %s1782_s8, %s25_s8   ;;  %s1711_s30 = sphi %s1780_s30, %s2185_s30   ;;  %s1707_s29 = sphi %s1778_s29, %s2184_s29   ;;  %s1703_s28 = sphi %s1776_s28, %s2183_s28   ;;  %s1699_s27 = sphi %s1774_s27, %s2182_s27   ;;  %s1695_s26 = sphi %s1772_s26, %s2181_s26   ;;  %s1691_s25 = sphi %s1770_s25, %s2180_s25   ;;  %s1687_s24 = sphi %s1768_s24, %s2179_s24  }
  0x10   : > { %2153 = sst [smem:[#allocation18_spill]] %s1703_s28  ;;  %s994_s10 = sadd.s32 4294967294, %s1715_s8  }
  0x11   : > { %p59_p0 = scmp.ne.s32.totalorder %s1691_s25, %s1687_s24  ;;  %p1812_p1 = scmp.eq.s32.totalorder %s993_s9, 0 }
  0x12   : > { %p1816_p2 = scmp.eq.s32.totalorder %s993_s9, 3  ;;  %p217_p3 = scmp.eq.s32.totalorder %s994_s10, 3 }
  0x13   : > { %s2154_s11 = scalar_select %p1812_p1, 1, 0 }
  0x14   : > { %s2155_s12 = scalar_select %p1816_p2, 1, 0 }
  0x15   : > { %p1822_p4 = por %p1812_p1, %p59_p0  ;;  %p995_p5 = scmp.ge.s32.totalorder %s1715_s8, 1 }
  0x16   : > { %p1827_p6 = por %p217_p3, %p59_p0  ;;  %p224_p7 = scmp.lt.s32.totalorder %s1715_s8, 5 }
  0x17   : > { %s2156_s13 = scalar_select %p1822_p4, 1, 0 }
  0x18   : > { %s2157_s14 = scalar_select %p1827_p6, 1, 0 }
  0x19   : > { %p1832_p8 = pnand %p995_p5, %p224_p7  ;;  %s1717_s16 = smov [#allocation7]  }
  0x1a   : > { %2158 = sst [smem:[#allocation19_spill]] %s2157_s14  ;;  %s236_s17 = sshll.u32 %s1717_s16, 4  ;;  %s1836_s17 = int_to_ptr.vmem [resolvable:$true] %s236_s17 }
  0x1b   : > { %s2159_s15 = scalar_select %p1832_p8, 1, 0 }
  0x1c   : > { %p1396_p9 = pneg %p1832_p8  ;;  %s1718_s19 = smov [#allocation9]  }
  0x1d   : > { %s252_s20 = sshll.u32 %s1718_s19, 4  ;;  %s1719_s21 = smov [#allocation10]   ;;  %s1846_s20 = int_to_ptr.vmem [resolvable:$true] %s252_s20 }
  0x1e   : > { %p1842_p10 = pnand %p1396_p9, %p1812_p1  ;;  %s1848_s22 = sshll.u32 %s1719_s21, 4  ;;  %s269_s22 = int_to_ptr.vmem [resolvable:$true] %s1848_s22 }
  0x1f   : > { %s2161_s1 = sld [smem:[#allocation20_spill]] }
  0x20   : > { %p1858_p12 = pneg %p1842_p10 }
  0x25   : > { %s1495_s10 = scalar_lea.hbm %s2161_s1, 6144 }
  0x26   : > { %p1496_p11 = scmp.ne.s32.totalorder %s2161_s1, %s1495_s10  ;;  %p1502_p3 = scmp.lt.u32.totalorder %s1495_s10, %s2161_s1 }
  0x28   : > { %p1498_p13 = pnand %p1858_p12, %p1496_p11 }
  0x2a   : > { %p1499_p0 = pneg %p1498_p13 }
  0x2c   : > { %p1504_p5 = pnand %p1502_p3, %p1499_p0 }
  0x2e   : > { %1507 = shalt.err (!%p1504_p5)
}
  0x2f   : > { %s1508_s14 = scalar_lea.vmem %s1836_s17, 6144  ;;  %p1516_p1 = scmp.lt.s32.totalorder %s1836_s17, %s1836_s17 }
  0x30   : > { %p1509_p7 = scmp.ne.s32.totalorder %s1836_s17, %s1508_s14  ;;  %p1517_p4 = scmp.lt.s32.totalorder %s1508_s14, %s1508_s14 }
  0x32   : > { %p1511_p9 = pnand %p1509_p7, %p1858_p12  ;;  %p1518_p11 = por %p1517_p4, %p1516_p1 }
  0x34   : > { %p1512_p6 = pneg %p1511_p9 }
  0x36   : > { %p1519_p13 = pnand %p1518_p11, %p1512_p6 }
  0x38   : > { %1522 = shalt.err (!%p1519_p13)
}
  0x39   : > { %s1720_s23 = smov 128   ;;  %s1721_s9 = smov 8  }
  0x3a   : > { %1399 = dma.hbm_to_vmem [thread:$0]  (!%p1842_p10), %s2161_s1, 6144, %s1836_s17, [#allocation8], %s1720_s23, %s1720_s23, %s1721_s9  }
  0x3b   : > { %s2163_s3 = sld [smem:[#allocation21_spill]] }
  0x41   : > { %s1523_s14 = scalar_lea.hbm %s2163_s3, 6144 }
  0x42   : > { %p1524_p1 = scmp.ne.s32.totalorder %s2163_s3, %s1523_s14  ;;  %p1530_p0 = scmp.lt.u32.totalorder %s1523_s14, %s2163_s3 }
  0x44   : > { %p1526_p4 = pnand %p1524_p1, %p1858_p12 }
  0x46   : > { %p1527_p6 = pneg %p1526_p4 }
  0x48   : > { %p1532_p3 = pnand %p1530_p0, %p1527_p6 }
  0x4a   : > { %1535 = shalt.err (!%p1532_p3)
}
  0x4b   : > { %s1536_s17 = scalar_lea.vmem %s1846_s20, 6144  ;;  %p1544_p11 = scmp.lt.s32.totalorder %s1846_s20, %s1846_s20 }
  0x4c   : > { %p1537_p5 = scmp.ne.s32.totalorder %s1846_s20, %s1536_s17  ;;  %p1545_p13 = scmp.lt.s32.totalorder %s1536_s17, %s1536_s17 }
  0x4e   : > { %p1539_p7 = pnand %p1537_p5, %p1858_p12  ;;  %p1546_p1 = por %p1545_p13, %p1544_p11 }
  0x50   : > { %p1540_p9 = pneg %p1539_p7 }
  0x52   : > { %p1547_p4 = pnand %p1546_p1, %p1540_p9 }
  0x54   : > { %1550 = shalt.err (!%p1547_p4)
}
  0x55   : > { %1402 = dma.hbm_to_vmem [thread:$0]  (!%p1842_p10), %s2163_s3, 6144, %s1846_s20, [#allocation8], %s1720_s23, %s1720_s23, %s1721_s9  }
  0x56   : > { %s1551_s10 = scalar_lea.hbm %s2137_s5, 2048 }
  0x57   : > { %p1552_p6 = scmp.ne.s32.totalorder %s2137_s5, %s1551_s10  ;;  %p1558_p5 = scmp.lt.u32.totalorder %s1551_s10, %s2137_s5 }
  0x59   : > { %p1554_p0 = pnand %p1552_p6, %p1858_p12 }
  0x5b   : > { %p1555_p3 = pneg %p1554_p0 }
  0x5d   : > { %p1560_p7 = pnand %p1558_p5, %p1555_p3 }
  0x5f   : > { %1563 = shalt.err (!%p1560_p7)
}
  0x60   : > { %s1564_s17 = scalar_lea.vmem %s269_s22, 2048  ;;  %p1572_p1 = scmp.lt.s32.totalorder %s269_s22, %s269_s22 }
  0x61   : > { %p1565_p9 = scmp.ne.s32.totalorder %s269_s22, %s1564_s17  ;;  %p1573_p4 = scmp.lt.s32.totalorder %s1564_s17, %s1564_s17 }
  0x63   : > { %p1567_p11 = pnand %p1565_p9, %p1858_p12  ;;  %p1574_p8 = por %p1573_p4, %p1572_p1 }
  0x65   : > { %p1568_p13 = pneg %p1567_p11 }
  0x67   : > { %p1575_p2 = pnand %p1574_p8, %p1568_p13 }
  0x69   : > { %1578 = shalt.err (!%p1575_p2)
}
  0x6a   : > { %1405 = dma.hbm_to_vmem [thread:$0]  (!%p1842_p10), %s2137_s5, 2048, %s269_s22, [#allocation11], %s1720_s23, %s1720_s23, %s1721_s9  }
  0x6b   : > { %s34_s24 = sadd.s32 1, %s1707_s29  ;;  %s37_s18 = sadd.s32 1, %s1711_s30 }
  0x6c   : > { %p35_p2 = scmp.ge.s32.totalorder %s34_s24, 2  ;;  %s46_s6 = sadd.s32 1, %s1695_s26 }
  0x6d   : > { %p53_p8 = scmp.ne.s32.totalorder %s1695_s26, %s1691_s25  ;;  %p54_p12 = scmp.eq.s32.totalorder %s1715_s8, 0 }
  0x6e   : > { %s2187_s24 = smov (%p35_p2, %s34_s24), 0  ;;  %s2189_s18 = smov (!%p35_p2, %s37_s18), %s1711_s30 }
  0x6f   : > { %s42_s7 = ssub.s32 %s1707_s29, %s2187_s24  ;;  %p39_p6 = scmp.ge.s32.totalorder %s2189_s18, 2 }
  0x70   : > { %p2164_p0 = scmp.ne.s32.totalorder %s2155_s12, 0  ;;  %p1947_p10 = por %p54_p12, %p53_p8 }
  0x71   : > { %p1417_p5 = scmp.lt.s32.totalorder %s1715_s8, 4  ;;  %s2191_s18 = smov (%p39_p6, %s2189_s18), 0 }
  0x72   : > { %p1943_p3 = por %p2164_p0, %p53_p8  ;;  %s285_s23 = sand.u32 1, %s1695_s26  }
  0x73   : > { %s1001_s9 = sshll.u32 %s1711_s30, 1  ;;  %s41_s10 = ssub.s32 %s1711_s30, %s2191_s18 }
  0x74   : > { %s43_s16 = sor.u32 %s42_s7, %s41_s10  ;;  %s1000_s19 = sshll.u32 %s285_s23, 3 }
  0x75   : > { %p44_p7 = scmp.eq.s32.totalorder %s43_s16, 0  ;;  %s294_s12 = sadd.s32 %s1707_s29, %s1001_s9 }
  0x76   : > { %s289_s21 = scalar_lea.vmem [#allocation4], %s1000_s19  ;;  %s1002_s20 = sshll.u32 %s294_s12, 7 }
  0x77   : > { %s298_s14 = sshll.u32 %s289_s21, 4  ;;  %s1967_s3 = scalar_lea.hbm %s2132_s0, %s1002_s20  ;;  %s1962_s14 = int_to_ptr.vmem [resolvable:$true] %s298_s14 }
  0x78   : > { %s1960_s17 = scalar_select %p44_p7, %s1695_s26, %s46_s6  }
  0x79   : > { %p1973_p9 = pnand %p1417_p5, %p1947_p10  ;;  %s286_s6 = scalar_lea.sflag [#allocation5], %s285_s23 }
  0x7a   : > { %s1579_s9 = scalar_lea.hbm %s1967_s3, 128  ;;  %s1584_s10 = scalar_lea.hbm %s2132_s0, 512 }
  0x7b   : > { %p1580_p11 = scmp.ne.s32.totalorder %s1967_s3, %s1579_s9  ;;  %p1581_p13 = pneg %p1973_p9 }
  0x7c   : > { %p1585_p2 = scmp.lt.u32.totalorder %s1967_s3, %s2132_s0  ;;  %p1586_p8 = scmp.lt.u32.totalorder %s1584_s10, %s1579_s9 }
  0x7d   : > { %p1582_p1 = pnand %p1581_p13, %p1580_p11  ;;  %p1588_p6 = scmp.lt.u32.totalorder %s1579_s9, %s1967_s3 }
  0x7e   : > { %p1587_p12 = por %p1586_p8, %p1585_p2 }
  0x7f   : > { %p1583_p4 = pneg %p1582_p1 }
  0x80   : > { %p1589_p0 = por %p1588_p6, %p1587_p12 }
  0x82   : > { %p1590_p10 = pnand %p1589_p0, %p1583_p4 }
  0x84   : > { %1593 = shalt.err (!%p1590_p10)
}
  0x85   : > { %s1594_s23 = scalar_lea.vmem %s1962_s14, 128  ;;  %s1722_s12 = smov [#allocation4]  }
  0x86   : > { %p1595_p5 = scmp.ne.s32.totalorder %s1962_s14, %s1594_s23  ;;  %s1599_s21 = sshll.u32 %s1722_s12, 4  ;;  %s1600_s21 = int_to_ptr.vmem [resolvable:$false] %s1599_s21 }
  0x87   : > { %s1601_s20 = scalar_lea.vmem %s1600_s21, 256  ;;  %p1602_p1 = scmp.lt.s32.totalorder %s1962_s14, %s1600_s21 }
  0x88   : > { %p1597_p7 = pnand %p1595_p5, %p1581_p13  ;;  %p1603_p2 = scmp.lt.s32.totalorder %s1601_s20, %s1594_s23 }
  0x8a   : > { %p1598_p11 = pneg %p1597_p7  ;;  %p1604_p8 = por %p1603_p2, %p1602_p1 }
  0x8c   : > { %p1605_p12 = pnand %p1604_p8, %p1598_p11 }
  0x8e   : > { %1608 = shalt.err (!%p1605_p12)
}
  0x8f   : > { %1409 = dma.hbm_to_vmem [thread:$0]  (!%p1973_p9), %s1967_s3, 128, %s1962_s14, %s286_s6  }
  0x90   : > { %p2168_p4 = scmp.ne.s32.totalorder %s2159_s15, 0 }
  0x91   : > { %s2005_s4 = sand.u32 (!%p2168_p4), 1, %s1691_s25   ;;  %p2169_p13 = scmp.ne.s32.totalorder (!%p2168_p4), %s2156_s13, 0 }
  0x92   : > { %307 = sbr.rel (%p2168_p4) target bundleno = 697 (0x2b9), region = 48  ;;  %s1004_s9 = sshll.u32 (!%p2168_p4), %s2005_s4, 3 }
  0x93   : > { %s310_s1 = scalar_lea.sflag (!%p2168_p4), [#allocation5], %s2005_s4  ;;  %s2009_s22 = scalar_lea.vmem (!%p2168_p4), [#allocation4], %s1004_s9 }
  0x99   : > { %1670 = dma.done.wait (%p2169_p13), %s310_s1, 128  }
  0x9a   : > { %1672 = vsyncadd (%p2169_p13), %s310_s1, 4294967168  ;;  %p2170_p9 = scmp.ne.s32.totalorder %s2154_s11, 0 }
  0x9c   : > { %1674 = dma.done.wait (%p2170_p9), [#allocation8], 12288  }
  0x9d   : > { %1676 = vsyncadd (%p2170_p9), [#allocation8], 4294955008 }
  0x9e   : > { %1678 = dma.done.wait (%p2170_p9), [#allocation11], 2048  }
  0x9f   : > { %1680 = vsyncadd (%p2170_p9), [#allocation11], 4294965248  ;;  %s2023_s3 = scalar_lea.vmem [#allocation12], %s1004_s9  ;;  %p1009_p6 = scmp.ne.s32.totalorder %s1699_s27, 0 }
  0xa0   : > { %v1723_v0 = vmov (!%p1009_p6), 0.0  }
  0xa1   : > { %359 = sbr.rel (%p1009_p6) target bundleno = 168 (0xa8), region = 68  ;;  %360 = vst [vmem:[#allocation2] sm:$0xf] (!%p1009_p6), %v1723_v0  ;;  %361 = vst [vmem:[#allocation3] sm:$0xf] (!%p1009_p6), %v1723_v0 }
  0xa8 PF: > { %v383_v1 = vld [vmem:[#allocation7 + $0x80] sm:$0xff]  ;;  %v384_v2 = vld [vmem:[#allocation7 + $0x88] sm:$0xff]  ;;  %v385_v6 = vld [vmem:[#allocation7 + $0x90] sm:$0xff]  ;;  %v1724_v8 = vmov 0.0|0.0   ;;  %vm1725_vm0 = vmmov 0   ;;  %v1726_v9 = vmov 0.0  }
  0xa9   : > { %v367_v3 = vld [vmem:[#allocation7] sm:$0xff]  ;;  %v1244_v4 = vpack.c.bf16 %v384_v2, %v383_v1  ;;  %v368_v5 = vld [vmem:[#allocation7 + $0x8] sm:$0xff]  ;;  %v386_v7 = vld [vmem:[#allocation7 + $0x98] sm:$0xff]  ;;  %1276 = vmatprep.subr.bf16.mxu1 %v1724_v8  ;;  %1171 = vmatprep.mubr.msk.f32.mxu1 %vm1725_vm0, %v1726_v9  ;;  %s2171_s15 = sld [smem:[#allocation18_spill]]  ;;  %s2172_s6 = sld [smem:[#allocation22_spill]] }
  0xaa   : > { %v1246_v10 = vpack.c.bf16 %v368_v5, %v367_v3  ;;  %v1248_v11 = vpack.c.bf16 %v386_v7, %v385_v6  ;;  %v369_v12 = vld [vmem:[#allocation7 + $0x10] sm:$0xff]  ;;  %v370_v13 = vld [vmem:[#allocation7 + $0x18] sm:$0xff]  ;;  %v399_v14 = vld [vmem:[#allocation7 + $0x100] sm:$0xff]  ;;  %s2173_s23 = sld [smem:[#allocation23_spill]]  ;;  %s879_s20 = sshll.u32 %s2023_s3, 4  ;;  %s2079_s20 = int_to_ptr.vmem [resolvable:$true] %s879_s20 }
  0xab   : > { %1245 = vmatprep.subr.bf16.mxu0 %v1244_v4  ;;  %v400_v15 = vld [vmem:[#allocation7 + $0x108] sm:$0xff]  ;;  %v387_v16 = vld [vmem:[#allocation7 + $0xa0] sm:$0xff]  ;;  %v1250_v18 = vpack.c.bf16 %v370_v13, %v369_v12  ;;  %v401_v20 = vld [vmem:[#allocation7 + $0x110] sm:$0xff]  ;;  %s1609_s13 = scalar_lea.vmem %s2079_s20, 128 }
  0xac   : > { %v388_v17 = vld [vmem:[#allocation7 + $0xa8] sm:$0xff]  ;;  %1247 = vmatpush3.bf16.msra.mxu0 %v1246_v10  ;;  %v1277_v19 = vpack.c.bf16 %v400_v15, %v399_v14  ;;  %v371_v22 = vld [vmem:[#allocation7 + $0x20] sm:$0xff]  ;;  %v402_v24 = vld [vmem:[#allocation7 + $0x118] sm:$0xff]  ;;  %p1610_p0 = scmp.ne.s32.totalorder %s2079_s20, %s1609_s13 }
  0xad   : > { %1249 = vmatprep.subr.bf16.mxu0 %v1248_v11  ;;  %v1252_v21 = vpack.c.bf16 %v388_v17, %v387_v16  ;;  %v372_v23 = vld [vmem:[#allocation7 + $0x28] sm:$0xff]  ;;  %v1280_v25 = vpack.c.bf16 %v402_v24, %v401_v20  ;;  %v389_v26 = vld [vmem:[#allocation7 + $0xb0] sm:$0xff]  ;;  %v390_v27 = vld [vmem:[#allocation7 + $0xb8] sm:$0xff] }
  0xae   : > { %1278 = vmatpush3.bf16.msra.mxu1 %v1277_v19  ;;  %v403_v28 = vld [vmem:[#allocation7 + $0x120] sm:$0xff]  ;;  %v404_v29 = vld [vmem:[#allocation7 + $0x128] sm:$0xff]  ;;  %v1254_v30 = vpack.c.bf16 %v372_v23, %v371_v22  ;;  %v1256_v31 = vpack.c.bf16 %v390_v27, %v389_v26  ;;  %v373_v32 = vld [vmem:[#allocation7 + $0x30] sm:$0xff]  ;;  %p1611_p10 = pnand %p1610_p0, %p1943_p3 }
  0xaf   : > { %1279 = vmatprep.subr.bf16.mxu1 %v1724_v8  ;;  %v374_v33 = vld [vmem:[#allocation7 + $0x38] sm:$0xff]  ;;  %v1283_v34 = vpack.c.bf16 %v404_v29, %v403_v28  ;;  %v391_v35 = vld [vmem:[#allocation7 + $0xc0] sm:$0xff]  ;;  %v392_v36 = vld [vmem:[#allocation7 + $0xc8] sm:$0xff]  ;;  %s1014_s10 = sshll.u32 %s2171_s15, 1  ;;  %s1727_s15 = smov [#allocation12]  }
  0xb0   : > { %1251 = vmatpush3.bf16.msra.mxu0 %v1250_v18  ;;  %v405_v37 = vld [vmem:[#allocation7 + $0x130] sm:$0xff]  ;;  %v406_v38 = vld [vmem:[#allocation7 + $0x138] sm:$0xff]  ;;  %v1258_v39 = vpack.c.bf16 %v374_v33, %v373_v32  ;;  %v1260_v40 = vpack.c.bf16 %v392_v36, %v391_v35  ;;  %v375_v41 = vld [vmem:[#allocation7 + $0x40] sm:$0xff]  ;;  %s875_s12 = sadd.s32 %s1699_s27, %s1014_s10  ;;  %s864_s27 = scalar_lea.sflag [#allocation6], %s2005_s4 }
  0xb1   : > { %1253 = vmatprep.subr.bf16.mxu0 %v1252_v21  ;;  %v376_v42 = vld [vmem:[#allocation7 + $0x48] sm:$0xff]  ;;  %v1286_v43 = vpack.c.bf16 %v406_v38, %v405_v37  ;;  %v393_v44 = vld [vmem:[#allocation7 + $0xd0] sm:$0xff]  ;;  %v394_v45 = vld [vmem:[#allocation7 + $0xd8] sm:$0xff]  ;;  %s1015_s21 = sshll.u32 %s875_s12, 7  ;;  %p1612_p5 = pneg %p1611_p10 }
  0xb2   : > { %1281 = vmatpush3.bf16.msra.mxu1 %v1280_v25  ;;  %v407_v46 = vld [vmem:[#allocation7 + $0x140] sm:$0xff]  ;;  %v408_v47 = vld [vmem:[#allocation7 + $0x148] sm:$0xff]  ;;  %v2033_v48 = vld [vmem:[%s2009_s22] sm:$0xff]  ;;  %v1262_v49 = vpack.c.bf16 %v376_v42, %v375_v41  ;;  %v1264_v50 = vpack.c.bf16 %v394_v45, %v393_v44  ;;  %s2174_s22 = sld [smem:[#allocation24_spill]]  ;;  %s1613_s14 = sshll.u32 %s1727_s15, 4  ;;  %s1614_s14 = int_to_ptr.vmem [resolvable:$false] %s1613_s14 }
  0xb3   : > { %1282 = vmatprep.subr.bf16.mxu1 %v1724_v8  ;;  %363 = vst [vmem:[#allocation2 + $0x4] sm:$0xff] %v2033_v48  ;;  %v377_v51 = vld [vmem:[#allocation7 + $0x50] sm:$0xff]  ;;  %v378_v52 = vld [vmem:[#allocation7 + $0x58] sm:$0xff]  ;;  %v1289_v53 = vpack.c.bf16 %v408_v47, %v407_v46  ;;  %v395_v54 = vld [vmem:[#allocation7 + $0xe0] sm:$0xff]  ;;  %s1615_s7 = scalar_lea.vmem %s1614_s14, 256  ;;  %p1616_p7 = scmp.lt.s32.totalorder %s2079_s20, %s1614_s14 }
  0xb4   : > { %1255 = vmatpush3.bf16.msra.mxu0 %v1254_v30  ;;  %v396_v55 = vld [vmem:[#allocation7 + $0xe8] sm:$0xff]  ;;  %v409_v56 = vld [vmem:[#allocation7 + $0x150] sm:$0xff]  ;;  %v410_v57 = vld [vmem:[#allocation7 + $0x158] sm:$0xff]  ;;  %v1266_v58 = vpack.c.bf16 %v378_v52, %v377_v51  ;;  %p1617_p11 = scmp.lt.s32.totalorder %s1615_s7, %s1609_s13 }
  0xb5   : > { %1257 = vmatprep.subr.bf16.mxu0 %v1256_v31  ;;  %v1268_v59 = vpack.c.bf16 %v396_v55, %v395_v54  ;;  %v379_v60 = vld [vmem:[#allocation7 + $0x60] sm:$0xff]  ;;  %v380_v61 = vld [vmem:[#allocation7 + $0x68] sm:$0xff]  ;;  %v397_v62 = vld [vmem:[#allocation7 + $0xf0] sm:$0xff]  ;;  %v1292_v63 = vpack.c.bf16 %v410_v57, %v409_v56 }
  0xb6   : > { %1284 = vmatpush3.bf16.msra.mxu1 %v1283_v34  ;;  %v398_v0 = vld [vmem:[#allocation7 + $0xf8] sm:$0xff]  ;;  %v411_v1 = vld [vmem:[#allocation7 + $0x160] sm:$0xff]  ;;  %v412_v2 = vld [vmem:[#allocation7 + $0x168] sm:$0xff]  ;;  %v1270_v6 = vpack.c.bf16 %v380_v61, %v379_v60  ;;  %p1618_p1 = por %p1617_p11, %p1616_p7 }
  0xb7   : > { %1285 = vmatprep.subr.bf16.mxu1 %v1724_v8  ;;  %v1272_v7 = vpack.c.bf16 %v398_v0, %v397_v62  ;;  %v381_v10 = vld [vmem:[#allocation7 + $0x70] sm:$0xff]  ;;  %v382_v11 = vld [vmem:[#allocation7 + $0x78] sm:$0xff]  ;;  %v1295_v12 = vpack.c.bf16 %v412_v2, %v411_v1  ;;  %v583_v13 = vld [vmem:[#allocation9 + $0x80] sm:$0xff] }
  0xb8   : > { %1259 = vmatpush3.bf16.msra.mxu0 %v1258_v39  ;;  %v584_v14 = vld [vmem:[#allocation9 + $0x88] sm:$0xff]  ;;  %v413_v15 = vld [vmem:[#allocation7 + $0x170] sm:$0xff]  ;;  %v414_v16 = vld [vmem:[#allocation7 + $0x178] sm:$0xff]  ;;  %v1274_v17 = vpack.c.bf16 %v382_v11, %v381_v10  ;;  %s2077_s11 = scalar_lea.hbm %s2174_s22, %s1015_s21  ;;  %p1619_p2 = pnand %p1618_p1, %p1612_p5 }
  0xb9   : > { %1261 = vmatprep.subr.bf16.mxu0 %v1260_v40  ;;  %v1300_v18 = vpack.c.bf16 %v584_v14, %v583_v13  ;;  %v567_v19 = vld [vmem:[#allocation9] sm:$0xff]  ;;  %v568_v20 = vld [vmem:[#allocation9 + $0x8] sm:$0xff]  ;;  %v1298_v21 = vpack.c.bf16 %v414_v16, %v413_v15  ;;  %v585_v22 = vld [vmem:[#allocation9 + $0x90] sm:$0xff] }
  0xba   : > { %1287 = vmatpush3.bf16.msra.mxu1 %v1286_v43  ;;  %v365_v3 = vld [vmem:[#allocation2 + $0x2] sm:$0xff]  ;;  %v599_v24 = vld [vmem:[#allocation9 + $0x100] sm:$0xff]  ;;  %v600_v25 = vld [vmem:[#allocation9 + $0x108] sm:$0xff]  ;;  %v1302_v26 = vpack.c.bf16 %v568_v20, %v567_v19 }
  0xbb   : > { %1288 = vmatprep.subr.bf16.mxu1 %v1724_v8  ;;  %v364_v4 = vld [vmem:[#allocation2] sm:$0xff]  ;;  %v859_v5 = vld [vmem:[#allocation2 + $0x8] sm:$0xf]  ;;  %486 = vmatprep.mubr.f32.mxu0 %v365_v3  ;;  %v1333_v30 = vpack.c.bf16 %v600_v25, %v599_v24  ;;  %v587_v31 = vld [vmem:[#allocation9 + $0xa0] sm:$0xff] }
  0xbc   : > { %1263 = vmatpush3.bf16.msra.mxu0 %v1262_v49  ;;  %860 = vst [vmem:[#allocation2] sm:$0xf] %v859_v5  ;;  %v586_v23 = vld [vmem:[#allocation9 + $0x98] sm:$0xff]  ;;  %v569_v28 = vld [vmem:[#allocation9 + $0x10] sm:$0xff]  ;;  %v588_v32 = vld [vmem:[#allocation9 + $0xa8] sm:$0xff] }
  0xbd   : > { %1265 = vmatprep.subr.bf16.mxu0 %v1264_v50  ;;  %v1304_v27 = vpack.c.bf16 %v586_v23, %v585_v22  ;;  %v570_v29 = vld [vmem:[#allocation9 + $0x18] sm:$0xff]  ;;  %v601_v33 = vld [vmem:[#allocation9 + $0x110] sm:$0xff]  ;;  %v1308_v36 = vpack.c.bf16 %v588_v32, %v587_v31  ;;  %v571_v37 = vld [vmem:[#allocation9 + $0x20] sm:$0xff] }
  0xbe   : > { %1290 = vmatpush3.bf16.msra.mxu1 %v1289_v53  ;;  %v602_v34 = vld [vmem:[#allocation9 + $0x118] sm:$0xff]  ;;  %v1306_v35 = vpack.c.bf16 %v570_v29, %v569_v28  ;;  %v572_v38 = vld [vmem:[#allocation9 + $0x28] sm:$0xff]  ;;  %v589_v40 = vld [vmem:[#allocation9 + $0xb0] sm:$0xff] }
  0xbf   : > { %1291 = vmatprep.subr.bf16.mxu1 %v1724_v8  ;;  %v1336_v39 = vpack.c.bf16 %v602_v34, %v601_v33  ;;  %v590_v41 = vld [vmem:[#allocation9 + $0xb8] sm:$0xff]  ;;  %v603_v42 = vld [vmem:[#allocation9 + $0x120] sm:$0xff]  ;;  %v604_v43 = vld [vmem:[#allocation9 + $0x128] sm:$0xff]  ;;  %v1310_v44 = vpack.c.bf16 %v572_v38, %v571_v37 }
  0xc0   : > { %1267 = vmatpush3.bf16.msra.mxu0 %v1266_v58  ;;  %v1312_v45 = vpack.c.bf16 %v590_v41, %v589_v40  ;;  %v573_v46 = vld [vmem:[#allocation9 + $0x30] sm:$0xff]  ;;  %v574_v47 = vld [vmem:[#allocation9 + $0x38] sm:$0xff]  ;;  %v1339_v49 = vpack.c.bf16 %v604_v43, %v603_v42  ;;  %v607_v54 = vld [vmem:[#allocation9 + $0x140] sm:$0xff] }
  0xc1   : > { %1269 = vmatprep.subr.bf16.mxu0 %v1268_v59  ;;  %v605_v50 = vld [vmem:[#allocation9 + $0x130] sm:$0xff]  ;;  %v606_v51 = vld [vmem:[#allocation9 + $0x138] sm:$0xff]  ;;  %v1314_v52 = vpack.c.bf16 %v574_v47, %v573_v46  ;;  %v608_v55 = vld [vmem:[#allocation9 + $0x148] sm:$0xff] }
  0xc2   : > { %1293 = vmatpush3.bf16.msra.mxu1 %v1292_v63  ;;  %v1342_v53 = vpack.c.bf16 %v606_v51, %v605_v50  ;;  %v1345_v56 = vpack.c.bf16 %v608_v55, %v607_v54  ;;  %v609_v57 = vld [vmem:[#allocation9 + $0x150] sm:$0xff]  ;;  %v610_v58 = vld [vmem:[#allocation9 + $0x158] sm:$0xff]  ;;  %v591_v60 = vld [vmem:[#allocation9 + $0xc0] sm:$0xff] }
  0xc3   : > { %1294 = vmatprep.subr.bf16.mxu1 %v1724_v8  ;;  %v1348_v59 = vpack.c.bf16 %v610_v58, %v609_v57  ;;  %v592_v61 = vld [vmem:[#allocation9 + $0xc8] sm:$0xff]  ;;  %v575_v63 = vld [vmem:[#allocation9 + $0x40] sm:$0xff]  ;;  %v593_v5 = vld [vmem:[#allocation9 + $0xd0] sm:$0xff] }
  0xc4   : > { %1271 = vmatpush3.bf16.msra.mxu0 %v1270_v6  ;;  %v1316_v62 = vpack.c.bf16 %v592_v61, %v591_v60  ;;  %v576_v0 = vld [vmem:[#allocation9 + $0x48] sm:$0xff]  ;;  %v611_v1 = vld [vmem:[#allocation9 + $0x160] sm:$0xff]  ;;  %v594_v6 = vld [vmem:[#allocation9 + $0xd8] sm:$0xff] }
  0xc5   : > { %1273 = vmatprep.subr.bf16.mxu0 %v1272_v7  ;;  %v1318_v2 = vpack.c.bf16 %v576_v0, %v575_v63  ;;  %v612_v3 = vld [vmem:[#allocation9 + $0x168] sm:$0xff]  ;;  %v1320_v7 = vpack.c.bf16 %v594_v6, %v593_v5  ;;  %v577_v10 = vld [vmem:[#allocation9 + $0x50] sm:$0xff]  ;;  %v578_v11 = vld [vmem:[#allocation9 + $0x58] sm:$0xff] }
  0xc6   : > { %1296 = vmatpush3.bf16.msra.mxu1 %v1295_v12  ;;  %v613_v12 = vld [vmem:[#allocation9 + $0x170] sm:$0xff]  ;;  %v1322_v13 = vpack.c.bf16 %v578_v11, %v577_v10  ;;  %v614_v14 = vld [vmem:[#allocation9 + $0x178] sm:$0xff]  ;;  %v595_v16 = vld [vmem:[#allocation9 + $0xe0] sm:$0xff] }
  0xc7   : > { %1297 = vmatprep.subr.bf16.mxu1 %v1724_v8  ;;  %v1354_v15 = vpack.c.bf16 %v614_v14, %v613_v12  ;;  %v579_v19 = vld [vmem:[#allocation9 + $0x60] sm:$0xff]  ;;  %v580_v20 = vld [vmem:[#allocation9 + $0x68] sm:$0xff]  ;;  %v597_v22 = vld [vmem:[#allocation9 + $0xf0] sm:$0xff] }
  0xc8   : > { %1275 = vmatpush3.bf16.msra.mxu0 %v1274_v17  ;;  %v596_v17 = vld [vmem:[#allocation9 + $0xe8] sm:$0xff]  ;;  %v598_v23 = vld [vmem:[#allocation9 + $0xf8] sm:$0xff]  ;;  %v581_v24 = vld [vmem:[#allocation9 + $0x70] sm:$0xff] }
  0xc9   : > { %1301 = vmatprep.subr.bf16.mxu0 %v1300_v18  ;;  %v1324_v18 = vpack.c.bf16 %v596_v17, %v595_v16  ;;  %v1328_v25 = vpack.c.bf16 %v598_v23, %v597_v22  ;;  %v763_v37 = vld [vmem:[#allocation10] sm:$0xff]  ;;  %v764_v38 = vld [vmem:[#allocation10 + $0x8] sm:$0xff]  ;;  %v765_v40 = vld [vmem:[#allocation10 + $0x10] sm:$0xff] }
  0xca   : > { %1299 = vmatpush3.bf16.msra.mxu1 %v1298_v21  ;;  %v1326_v21 = vpack.c.bf16 %v580_v20, %v579_v19  ;;  %v766_v41 = vld [vmem:[#allocation10 + $0x18] sm:$0xff]  ;;  %v767_v46 = vld [vmem:[#allocation10 + $0x20] sm:$0xff]  ;;  %v768_v47 = vld [vmem:[#allocation10 + $0x28] sm:$0xff] }
  0xcb   : > { %487 = vmatmul.mubr.f32.vlgmr.msra.gmra.mrb[0].mxu0 %v364_v4  ;;  %1332 = vmatprep.subr.bf16.mxu1 %v1724_v8  ;;  %v1351_v4 = vpack.c.bf16 %v612_v3, %v611_v1  ;;  %v769_v50 = vld [vmem:[#allocation10 + $0x30] sm:$0xff]  ;;  %v770_v51 = vld [vmem:[#allocation10 + $0x38] sm:$0xff]  ;;  %v772_v54 = vld [vmem:[#allocation10 + $0x48] sm:$0xff] }
  0xcc   : > { %1303 = vmatpush3.bf16.msra.mxu0 %v1302_v26  ;;  %v582_v26 = vld [vmem:[#allocation9 + $0x78] sm:$0xff]  ;;  %v775_v58 = vld [vmem:[#allocation10 + $0x60] sm:$0xff]  ;;  %v777_v61 = vld [vmem:[#allocation10 + $0x70] sm:$0xff] }
  0xcd   : > { %1172 = vmatmul.mubr.f32.vlgmr.msra.gmra.mrb[0].mxu1 %v2033_v48  ;;  %1305 = vmatprep.subr.bf16.mxu0 %v1304_v27  ;;  %v1330_v27 = vpack.c.bf16 %v582_v26, %v581_v24  ;;  %v1011_v3 = vld [vmem:[%s2172_s6] ss:$0 sm:$0xff] }
  0xce   : > { %1334 = vmatpush3.bf16.msra.mxu1 %v1333_v30  ;;  %1206 = vmatprep.mubr.msk.f32.mxu1 %vm1725_vm0, %v1726_v9  ;;  %v1010_v30 = vld [vmem:[%s2134_s2] ss:$0 sm:$0xff] }
  0xcf   : > { %1335 = vmatprep.subr.bf16.mxu1 %v1724_v8 }
  0xd0   : > { %1307 = vmatpush3.bf16.msra.mxu0 %v1306_v35 }
  0xd1   : > { %1309 = vmatprep.subr.bf16.mxu0 %v1308_v36 }
  0xd2   : > { %1337 = vmatpush3.bf16.msra.mxu1 %v1336_v39  ;;  %v1357_v39 = vpack.c.bf16 %v764_v38, %v763_v37 }
  0xd3   : > { %1338 = vmatprep.subr.bf16.mxu1 %v1724_v8 }
  0xd4   : > { %1311 = vmatpush3.bf16.msra.mxu0 %v1310_v44 }
  0xd5   : > { %1313 = vmatprep.subr.bf16.mxu0 %v1312_v45  ;;  %v1360_v45 = vpack.c.bf16 %v766_v41, %v765_v40 }
  0xd6   : > { %1340 = vmatpush3.bf16.msra.mxu1 %v1339_v49  ;;  %v1363_v49 = vpack.c.bf16 %v768_v47, %v767_v46 }
  0xd7   : > { %1341 = vmatprep.subr.bf16.mxu1 %v1724_v8 }
  0xd8   : > { %1315 = vmatpush3.bf16.msra.mxu0 %v1314_v52  ;;  %v1366_v52 = vpack.c.bf16 %v770_v51, %v769_v50 }
  0xd9   : > { %1317 = vmatprep.subr.bf16.mxu0 %v1316_v62  ;;  %v778_v62 = vld [vmem:[#allocation10 + $0x78] sm:$0xff] }
  0xda   : > { %1343 = vmatpush3.bf16.msra.mxu1 %v1342_v53  ;;  %v771_v53 = vld [vmem:[#allocation10 + $0x40] sm:$0xff]  ;;  %v1378_v63 = vpack.c.bf16 %v778_v62, %v777_v61 }
  0xdb   : > { %1344 = vmatprep.subr.bf16.mxu1 %v1724_v8  ;;  %v1369_v55 = vpack.c.bf16 %v772_v54, %v771_v53 }
  0xdc   : > { %1319 = vmatpush3.bf16.msra.mxu0 %v1318_v2 }
  0xdd   : > { %1321 = vmatprep.subr.bf16.mxu0 %v1320_v7 }
  0xde   : > { %1346 = vmatpush3.bf16.msra.mxu1 %v1345_v56  ;;  %v774_v56 = vld [vmem:[#allocation10 + $0x58] sm:$0xff] }
  0xdf   : > { %1347 = vmatprep.subr.bf16.mxu1 %v1724_v8 }
  0xe0   : > { %1323 = vmatpush3.bf16.msra.mxu0 %v1322_v13 }
  0xe1   : > { %1325 = vmatprep.subr.bf16.mxu0 %v1324_v18 }
  0xe2   : > { %1349 = vmatpush3.bf16.msra.mxu1 %v1348_v59  ;;  %v776_v59 = vld [vmem:[#allocation10 + $0x68] sm:$0xff] }
  0xe3   : > { %1350 = vmatprep.subr.bf16.mxu1 %v1724_v8  ;;  %v1375_v60 = vpack.c.bf16 %v776_v59, %v775_v58 }
  0xe4   : > { %1327 = vmatpush3.bf16.msra.mxu0 %v1326_v21 }
  0xe5   : > { %1329 = vmatprep.subr.bf16.mxu0 %v1328_v25 }
  0xe6   : > { %1352 = vmatpush3.bf16.msra.mxu1 %v1351_v4 }
  0xe7   : > { %1353 = vmatprep.subr.bf16.mxu1 %v1724_v8 }
  0xe8   : > { %1331 = vmatpush3.bf16.msra.mxu0 %v1330_v27 }
  0xe9   : > { %1356 = vmatprep.subr.bf16.mxu0 %v1724_v8 }
  0xea   : > { %1355 = vmatpush3.bf16.msra.mxu1 %v1354_v15 }
 0x19e   : > { %v1050_v28 = vpop.f32.mrb[0].mxu0 }
 0x19f   : > { %v1051_v29 = vpop.f32.mrb[1].mxu0 }
 0x1a0   : > { %v1052_v31 = vadd.f32 %v1051_v29, %v1050_v28  ;;  %v558_v32 = vpop.f32.mrb[0].mxu1 }
 0x1a1   : > { %v1173_v33 = vpop.f32.mrb[1].mxu1 }
 0x1a2   : > { %v489_v34 = vadd.f32 %v1052_v31, %v1010_v30 }
 0x1a4   : > { %v559_v35 = vadd.f32 %v558_v32, %v489_v34 }
 0x1a6   : > { %v562_v36 = vmax.f32 %v559_v35, 0.0 }
 0x1a8   : > { %563 = vst [vmem:[#allocation3 + $0x4] sm:$0xff] %v562_v36  ;;  %1207 = vmatmul.mubr.f32.vlgmr.msra.gmra.mrb[2].mxu1 %v562_v36 }
 0x1af   : > { %v565_v42 = vld [vmem:[#allocation3 + $0x2] sm:$0xff] }
 0x1b0   : > { %v564_v43 = vld [vmem:[#allocation3] sm:$0xff]  ;;  %v861_v44 = vld [vmem:[#allocation3 + $0x8] sm:$0xf]  ;;  %686 = vmatprep.mubr.f32.mxu0 %v565_v42 }
 0x1b1   : > { %862 = vst [vmem:[#allocation3] sm:$0xf] %v861_v44  ;;  %687 = vmatmul.mubr.f32.vlgmr.msra.gmra.mrb[2].mxu0 %v564_v43 }
 0x1b2   : > { %1358 = vmatpush3.bf16.msra.mxu0 %v1357_v39  ;;  %1241 = vmatprep.mubr.msk.f32.mxu0 %vm1725_vm0, %v1726_v9  ;;  %v773_v9 = vld [vmem:[#allocation10 + $0x50] sm:$0xff] }
 0x1b3   : > { %1359 = vmatprep.subr.bf16.mxu0 %v1724_v8  ;;  %v1372_v57 = vpack.c.bf16 %v774_v56, %v773_v9 }
 0x1b6   : > { %1361 = vmatpush3.bf16.msra.mxu0 %v1360_v45 }
 0x1b7   : > { %1362 = vmatprep.subr.bf16.mxu0 %v1724_v8 }
 0x1ba   : > { %1364 = vmatpush3.bf16.msra.mxu0 %v1363_v49 }
 0x1bb   : > { %1365 = vmatprep.subr.bf16.mxu0 %v1724_v8 }
 0x1be   : > { %1367 = vmatpush3.bf16.msra.mxu0 %v1366_v52 }
 0x1bf   : > { %1368 = vmatprep.subr.bf16.mxu0 %v1724_v8 }
 0x1c2   : > { %1370 = vmatpush3.bf16.msra.mxu0 %v1369_v55 }
 0x1c3   : > { %1371 = vmatprep.subr.bf16.mxu0 %v1724_v8 }
 0x1c6   : > { %1373 = vmatpush3.bf16.msra.mxu0 %v1372_v57 }
 0x1c7   : > { %1374 = vmatprep.subr.bf16.mxu0 %v1724_v8 }
 0x1ca   : > { %1376 = vmatpush3.bf16.msra.mxu0 %v1375_v60 }
 0x1cb   : > { %1377 = vmatprep.subr.bf16.mxu0 %v1724_v8  ;;  %v1012_v8 = vld [vmem:[%s2173_s23] ss:$0 sm:$0xff] }
 0x1ce   : > { %1379 = vmatpush3.bf16.msra.mxu0 %v1378_v63 }
 0x1d1   : > { %1242 = vmatmul.mubr.f32.vlgmr.msra.gmra.mrb[4].mxu0 %v2033_v48 }
 0x27b   : > { %v758_v0 = vpop.f32.mrb[2].mxu1 }
 0x27c   : > { %v1208_v1 = vpop.f32.mrb[3].mxu1 }
 0x284   : > { %v1102_v2 = vpop.f32.mrb[2].mxu0 }
 0x285   : > { %v1103_v4 = vpop.f32.mrb[3].mxu0 }
 0x286   : > { %v1104_v5 = vadd.f32 %v1103_v4, %v1102_v2 }
 0x288   : > { %v689_v6 = vadd.f32 %v1104_v5, %v1011_v3 }
 0x28a   : > { %v759_v7 = vadd.f32 %v758_v0, %v689_v6 }
 0x28c   : > { %v762_v10 = vmax.f32 %v759_v7, 0.0 }
 0x2a4   : > { %v852_v48 = vpop.f32.mrb[4].mxu0 }
 0x2a5   : > { %v853_v11 = vadd.f32 %v1012_v8, %v852_v48  ;;  %v1243_v12 = vpop.f32.mrb[5].mxu0 }
 0x2a7   : > { %v856_v13 = vadd.f32 %v853_v11, %v762_v10 }
 0x2a9   : > { %v857_v14 = vmax.f32 %v856_v13, 0.0 }
 0x2ab   : > { %858 = vst [vmem:[%s2023_s3] sm:$0xff] %v857_v14 }
 0x2ac   : > { %1622 = shalt.err (!%p1619_p2)
}
 0x2ad   : > { %s1623_s4 = scalar_lea.hbm %s2077_s11, 128  ;;  %s1627_s10 = scalar_lea.hbm %s2174_s22, 512 }
 0x2ae   : > { %p1624_p8 = scmp.ne.s32.totalorder %s2077_s11, %s1623_s4  ;;  %p1628_p13 = scmp.lt.u32.totalorder %s2077_s11, %s2174_s22 }
 0x2af   : > { %p1629_p9 = scmp.lt.u32.totalorder %s1627_s10, %s1623_s4  ;;  %p1631_p0 = scmp.lt.u32.totalorder %s1623_s4, %s2077_s11 }
 0x2b0   : > { %p1625_p12 = pnand %p1624_p8, %p1943_p3 }
 0x2b1   : > { %p1630_p6 = por %p1629_p9, %p1628_p13 }
 0x2b2   : > { %p1626_p4 = pneg %p1625_p12 }
 0x2b3   : > { %p1632_p10 = por %p1631_p0, %p1630_p6 }
 0x2b5   : > { %p1633_p5 = pnand %p1632_p10, %p1626_p4 }
 0x2b7   : > { %1636 = shalt.err (!%p1633_p5)
}
 0x2b8   : > { %1394 = dma.vmem_to_hbm [thread:$0]  (%p1943_p3), %s2079_s20, 128, %s2077_s11, %s864_s27  }
 0x2b9 PF: > { %s2175_s23 = sld [smem:[#allocation17_spill]]  ;;  %s2176_s12 = sld [smem:[#allocation19_spill]] }
 0x2ba   : > { %p1421_p7 = scmp.ge.s32.totalorder %s1715_s8, 2 }
 0x2bf   : > { %s891_s21 = sand.u32 1, %s2175_s23   ;;  %p2177_p11 = scmp.ne.s32.totalorder %s2176_s12, 0 }
 0x2c0   : > { %s892_s9 = scalar_lea.sflag [#allocation6], %s891_s21 }
 0x2c1   : > { %p1411_p1 = pnand %p1421_p7, %p2177_p11 }
 0x2c3   : > { %1682 = dma.done.wait (!%p1411_p1), %s892_s9, 128  }
 0x2c4   : > { %1684 = vsyncadd (!%p1411_p1), %s892_s9, 4294967168  ;;  %s25_s8 = sadd.s32 1, %s1715_s8   ;;  %s2178_s20 = smov %s2187_s24 }
 0x2c5   : > { %p22_p2 = scmp.ge.s32.totalorder %s25_s8, 6   ;;  %s2179_s24 = smov %s1691_s25 }
 0x2c6   : > { %s2180_s25 = smov %s1695_s26  ;;  %s2181_s26 = smov %s1960_s17 }
 0x2c7   : > { %s2182_s27 = smov %s1707_s29  ;;  %s2183_s28 = smov %s1711_s30 }
 0x2c8   : > { %s2184_s29 = smov %s2178_s20  ;;  %s2185_s30 = smov %s2191_s18 }
 0x2c9   :  { %24 = sbr.rel (!%p22_p2) target bundleno = 15 (0xf), region = 109 }
 0x2d0   :  { %897 = vsyncpa [#allocation5], 1 }
 0x2d1   :  { %899 = vsyncpa [#allocation5 + $0x1], 1 }
 0x2d2   :  { %900 = vsyncpa [#allocation8], 1 }
 0x2d3   :  { %901 = vsyncpa [#allocation11], 1 }
 0x2d4   :  { %902 = vsyncpa [#allocation6], 1 }
 0x2d5   :  { %904 = vsyncpa [#allocation6 + $0x1], 1 }

</bundles_post_ra>
